<compile_context>
chip_gen: v6e
topology: v6e:2x2x1
jax: 0.10.0
libtpu: 0.0.40
codegen_flags: <defaults>
</compile_context>

<pallas_src>
import functools

import jax
import jax.numpy as jnp
import numpy as np
from jax.experimental import pallas as pl
from jax.experimental.pallas import tpu as pltpu


def _round_up(v, m):
    return ((v + m - 1) // m) * m


def _lstm_kernel(x_ref, wx_ref, wh_ref, b_ref, wp_ref, bp_ref, out_ref,
                 xproj_ref, *, seq_len, hp):
    """One batch-tile of the LSTM, whole time loop inside the kernel.

    x_ref     : (S, TB, D)        f32 input sequence for this batch tile
    wx_ref    : (D,  4*Hp)        gate-fused input weights  [g | i | f | o], lane-padded per gate
    wh_ref    : (Hp, 4*Hp)        gate-fused recurrent weights (rows H:Hp zero)
    b_ref     : (1,  4*Hp)        gate-fused bias (lane-padded)
    wp_ref    : (Hp, Cp)          readout weight (rows H:Hp zero, lane-padded cols)
    bp_ref    : (1,  Cp)          readout bias (lane-padded)
    out_ref   : (TB, Cp)          logits (lane-padded)
    xproj_ref : (S, TB, 4*Hp)     VMEM scratch holding the hoisted input projection
    """
    TB = x_ref.shape[1]
    D = x_ref.shape[2]
    G = 4 * hp

    # ---- Hoisted input projection: ONE dense MXU matmul for all timesteps.
    # (bias broadcast happens once here, not inside the loop)
    x_all = x_ref[...].reshape(seq_len * TB, D)                      # (S*TB, D)
    xproj = (jnp.dot(x_all, wx_ref[...],
                     preferred_element_type=jnp.float32)
             + b_ref[...])                                           # (S*TB, G)
    xproj_ref[...] = xproj.reshape(seq_len, TB, G)

    wh = wh_ref[...]                                                 # (Hp, G), VMEM-resident

    def step(t, carry):
        h, c = carry
        # Per-step dependent work: one small matmul + lane-aligned gate vregs.
        gates = xproj_ref[t] + jnp.dot(h, wh,
                                       preferred_element_type=jnp.float32)
        # Each slice starts at a multiple of 128 lanes -> whole-vreg operands.
        g = jnp.tanh(gates[:, 0 * hp:1 * hp])
        i = jax.nn.sigmoid(gates[:, 1 * hp:2 * hp])
        f = jax.nn.sigmoid(gates[:, 2 * hp:3 * hp])
        o = jax.nn.sigmoid(gates[:, 3 * hp:4 * hp])
        c_new = g * i + c * f
        h_new = jnp.tanh(c_new) * o
        return h_new, c_new

    h0 = jnp.zeros((TB, hp), jnp.float32)
    c0 = jnp.zeros((TB, hp), jnp.float32)
    # Full unroll for short sequences; partial unroll keeps LLO visibility
    # without blowing vreg live ranges for long sequences.
    unroll = True if seq_len <= 16 else 8
    h_last, _ = jax.lax.fori_loop(0, seq_len, step, (h0, c0), unroll=unroll)

    # Linear readout of the LAST hidden state (lane-dense, unmasked store).
    out_ref[...] = (jnp.dot(h_last, wp_ref[...],
                            preferred_element_type=jnp.float32)
                    + bp_ref[...])


def lstm_forward(x, wx, wh, b, wp, bp):
    """x: (batch, seq, input_dim) f32. Returns logits (batch, num_classes).

    wx: (4, D, H), wh: (4, H, H), b: (4, 1, H) with gate order [g, i, f, o];
    wp: (H, C), bp: (1, C).
    """
    B, S, D = x.shape
    H = wh.shape[-1]
    C = wp.shape[-1]

    Hp = _round_up(H, 128)            # per-gate lane padding -> aligned gate vregs
    Cp = _round_up(C, 128)            # lane-dense logits
    Bp = _round_up(B, 8)              # sublane-dense batch
    TB = min(Bp, 64)                  # batch tile per grid step
    Bp = _round_up(Bp, TB)

    # (seq, batch, input_dim), batch zero-padded (padded rows sliced off after).
    x_sbd = jnp.transpose(x, (1, 0, 2))
    x_sbd = jnp.pad(x_sbd, ((0, 0), (0, Bp - B), (0, 0)))

    # Gate-fused, per-gate lane-padded weights.  Column block [k*Hp:(k+1)*Hp]
    # holds gate k in order [g, i, f, o]; padded rows/cols are zero so padded
    # h/c lanes stay exactly 0 through the recurrence.
    wx_p = jnp.pad(wx, ((0, 0), (0, 0), (0, Hp - H)))                # (4, D, Hp)
    wx_all = jnp.transpose(wx_p, (1, 0, 2)).reshape(D, 4 * Hp)       # (D, 4Hp)
    wh_p = jnp.pad(wh, ((0, 0), (0, Hp - H), (0, Hp - H)))           # (4, Hp, Hp)
    wh_all = jnp.transpose(wh_p, (1, 0, 2)).reshape(Hp, 4 * Hp)      # (Hp, 4Hp)
    b_all = jnp.pad(b, ((0, 0), (0, 0), (0, Hp - H))).reshape(1, 4 * Hp)
    wp_pad = jnp.pad(wp, ((0, Hp - H), (0, Cp - C)))                 # (Hp, Cp)
    bp_pad = jnp.pad(bp, ((0, 0), (0, Cp - C)))                      # (1, Cp)

    kernel = functools.partial(_lstm_kernel, seq_len=S, hp=Hp)

    out_pad = pl.pallas_call(
        kernel,
        out_shape=jax.ShapeDtypeStruct((Bp, Cp), jnp.float32),
        grid=(Bp // TB,),
        in_specs=[
            pl.BlockSpec((S, TB, D), lambda bt: (0, bt, 0)),      # x (batch-tiled)
            pl.BlockSpec((D, 4 * Hp), lambda bt: (0, 0)),         # Wx (resident)
            pl.BlockSpec((Hp, 4 * Hp), lambda bt: (0, 0)),        # Wh (resident)
            pl.BlockSpec((1, 4 * Hp), lambda bt: (0, 0)),         # bias
            pl.BlockSpec((Hp, Cp), lambda bt: (0, 0)),            # Wp
            pl.BlockSpec((1, Cp), lambda bt: (0, 0)),             # bp
        ],
        out_specs=pl.BlockSpec((TB, Cp), lambda bt: (bt, 0)),
        scratch_shapes=[pltpu.VMEM((S, TB, 4 * Hp), jnp.float32)],
        compiler_params=pltpu.CompilerParams(
            dimension_semantics=("parallel",)),
    )(x_sbd, wx_all, wh_all, b_all, wp_pad, bp_pad)

    return out_pad[:B, :C]


def lstm_reference(x, wx, wh, b, wp, bp):
    """Pure-JAX reference (same math, lax.scan over time)."""
    B = x.shape[0]
    H = wh.shape[-1]

    def step(carry, x_t):
        h, c = carry
        g = jnp.tanh(x_t @ wx[0] + h @ wh[0] + b[0])
        i = jax.nn.sigmoid(x_t @ wx[1] + h @ wh[1] + b[1])
        f = jax.nn.sigmoid(x_t @ wx[2] + h @ wh[2] + b[2])
        o = jax.nn.sigmoid(x_t @ wx[3] + h @ wh[3] + b[3])
        c = g * i + c * f
        h = jnp.tanh(c) * o
        return (h, c), None

    h0 = jnp.zeros((B, H), jnp.float32)
    c0 = jnp.zeros((B, H), jnp.float32)
    (h, _), _ = jax.lax.scan(step, (h0, c0), jnp.transpose(x, (1, 0, 2)))
    return h @ wp + bp


if __name__ == "__main__":
    # Small deterministic setup consistent with the module signature.
    seq_length, input_dim, num_hidden, num_classes, batch_size = 8, 16, 32, 10, 4

    key = jax.random.PRNGKey(0)
    keys = jax.random.split(key, 6)
    x = jax.random.normal(keys[0], (batch_size, seq_length, input_dim), jnp.float32)

    # Stacked gate parameters: order [g, i, f, o]
    wx = 0.1 * jax.random.normal(keys[1], (4, input_dim, num_hidden), jnp.float32)
    wh = 0.1 * jax.random.normal(keys[2], (4, num_hidden, num_hidden), jnp.float32)
    b = 0.1 * jax.random.normal(keys[3], (4, 1, num_hidden), jnp.float32)
    wp = 0.1 * jax.random.normal(keys[4], (num_hidden, num_classes), jnp.float32)
    bp = 0.1 * jax.random.normal(keys[5], (1, num_classes), jnp.float32)

    out = jax.block_until_ready(lstm_forward(x, wx, wh, b, wp, bp))
    ref = jax.block_until_ready(lstm_reference(x, wx, wh, b, wp, bp))
    np.testing.assert_allclose(np.asarray(out), np.asarray(ref),
                               rtol=1e-4, atol=1e-5)

    print("KERNEL_OK")
</pallas_src>

<mosaic_0001>
module attributes {stable_mosaic.version = 11 : i64} {
  func.func @_lstm_kernel(%arg0: i32, %arg1: memref<8x8x16xf32, #tpu.memory_space<vmem>>, %arg2: memref<16x512xf32, #tpu.memory_space<vmem>>, %arg3: memref<128x512xf32, #tpu.memory_space<vmem>>, %arg4: memref<1x512xf32, #tpu.memory_space<vmem>>, %arg5: memref<128x128xf32, #tpu.memory_space<vmem>>, %arg6: memref<1x128xf32, #tpu.memory_space<vmem>>, %arg7: memref<8x128xf32, #tpu.memory_space<vmem>>, %arg8: memref<8x8x512xf32, #tpu.memory_space<vmem>>) attributes {dimension_semantics = [#tpu.dimension_semantics<parallel>], iteration_bounds = array<i64: 1>, scalar_prefetch = 0 : i64, scratch_operands = 1 : i64, tpu.core_type = #tpu.core_type<tc>, window_params = [{transform_indices = @transform_0, window_bounds = array<i64: 8, 8, 16>}, {pipeline_mode = #tpu.pipeline_mode<synchronous>, transform_indices = @transform_1, window_bounds = array<i64: 16, 512>}, {pipeline_mode = #tpu.pipeline_mode<synchronous>, transform_indices = @transform_2, window_bounds = array<i64: 128, 512>}, {pipeline_mode = #tpu.pipeline_mode<synchronous>, transform_indices = @transform_3, window_bounds = array<i64: 1, 512>}, {pipeline_mode = #tpu.pipeline_mode<synchronous>, transform_indices = @transform_4, window_bounds = array<i64: 128, 128>}, {pipeline_mode = #tpu.pipeline_mode<synchronous>, transform_indices = @transform_5, window_bounds = array<i64: 1, 128>}, {transform_indices = @transform_6, window_bounds = array<i64: 8, 128>}]} {
    %c0 = arith.constant 0 : index
    %c0_0 = arith.constant 0 : index
    %c0_1 = arith.constant 0 : index
    %0 = vector.load %arg1[%c0, %c0_0, %c0_1] : memref<8x8x16xf32, #tpu.memory_space<vmem>>, vector<8x8x16xf32>
    %1 = vector.shape_cast %0 : vector<8x8x16xf32> to vector<64x16xf32>
    %c0_2 = arith.constant 0 : index
    %c0_3 = arith.constant 0 : index
    %2 = vector.load %arg2[%c0_2, %c0_3] : memref<16x512xf32, #tpu.memory_space<vmem>>, vector<16x512xf32>
    %cst = arith.constant dense<0.000000e+00> : vector<64x512xf32>
    %3 = tpu.matmul %1, %2, %cst {dimension_numbers = #tpu.dot_dimension_numbers<[1], [0], [0], [1], [0, 0, 1, 1], [], []>} : vector<64x16xf32>, vector<16x512xf32>, vector<64x512xf32> -> vector<64x512xf32>
    %c0_4 = arith.constant 0 : index
    %c0_5 = arith.constant 0 : index
    %4 = vector.load %arg4[%c0_4, %c0_5] : memref<1x512xf32, #tpu.memory_space<vmem>>, vector<1x512xf32>
    %5 = vector.broadcast %4 : vector<1x512xf32> to vector<64x512xf32>
    %6 = arith.addf %3, %5 : vector<64x512xf32>
    %7 = vector.shape_cast %6 : vector<64x512xf32> to vector<8x8x512xf32>
    %c0_6 = arith.constant 0 : index
    %c0_7 = arith.constant 0 : index
    %c0_8 = arith.constant 0 : index
    %8 = vector.load %arg8[%c0_6, %c0_7, %c0_8] : memref<8x8x512xf32, #tpu.memory_space<vmem>>, vector<8x8x512xf32>
    tpu.vector_store %arg8[%c0_6, %c0_7, %c0_8], %7 {strides = array<i32>} : memref<8x8x512xf32, #tpu.memory_space<vmem>>, vector<8x8x512xf32>,
    %c0_9 = arith.constant 0 : index
    %c0_10 = arith.constant 0 : index
    %9 = vector.load %arg3[%c0_9, %c0_10] : memref<128x512xf32, #tpu.memory_space<vmem>>, vector<128x512xf32>
    %cst_11 = arith.constant 0.000000e+00 : f32
    %10 = vector.broadcast %cst_11 : f32 to vector<8x128xf32>
    %cst_12 = arith.constant 0.000000e+00 : f32
    %11 = vector.broadcast %cst_12 : f32 to vector<8x128xf32>
    %c0_i32 = arith.constant 0 : i32
    %12 = arith.index_cast %c0_i32 : i32 to index
    %c0_13 = arith.constant 0 : index
    %c0_14 = arith.constant 0 : index
    %13 = vector.load %arg8[%12, %c0_13, %c0_14] : memref<8x8x512xf32, #tpu.memory_space<vmem>>, vector<1x8x512xf32>
    %14 = vector.shape_cast %13 : vector<1x8x512xf32> to vector<8x512xf32>
    %cst_15 = arith.constant dense<0.000000e+00> : vector<8x512xf32>
    %15 = tpu.matmul %10, %9, %cst_15 {dimension_numbers = #tpu.dot_dimension_numbers<[1], [0], [0], [1], [0, 0, 1, 1], [], []>} : vector<8x128xf32>, vector<128x512xf32>, vector<8x512xf32> -> vector<8x512xf32>
    %16 = arith.addf %14, %15 : vector<8x512xf32>
    %17 = vector.extract_strided_slice %16 {offsets = [0, 0], sizes = [8, 128], strides = [1, 1]} : vector<8x512xf32> to vector<8x128xf32>
    %18 = math.tanh %17 : vector<8x128xf32>
    %19 = vector.extract_strided_slice %16 {offsets = [0, 128], sizes = [8, 128], strides = [1, 1]} : vector<8x512xf32> to vector<8x128xf32>
    %20 = arith.negf %19 : vector<8x128xf32>
    %21 = math.exp %20 : vector<8x128xf32>
    %cst_16 = arith.constant 1.000000e+00 : f32
    %22 = vector.broadcast %cst_16 : f32 to vector<8x128xf32>
    %23 = arith.addf %22, %21 : vector<8x128xf32>
    %24 = arith.divf %22, %23 : vector<8x128xf32>
    %25 = vector.extract_strided_slice %16 {offsets = [0, 256], sizes = [8, 128], strides = [1, 1]} : vector<8x512xf32> to vector<8x128xf32>
    %26 = arith.negf %25 : vector<8x128xf32>
    %27 = math.exp %26 : vector<8x128xf32>
    %cst_17 = arith.constant 1.000000e+00 : f32
    %28 = vector.broadcast %cst_17 : f32 to vector<8x128xf32>
    %29 = arith.addf %28, %27 : vector<8x128xf32>
    %30 = arith.divf %28, %29 : vector<8x128xf32>
    %31 = vector.extract_strided_slice %16 {offsets = [0, 384], sizes = [8, 128], strides = [1, 1]} : vector<8x512xf32> to vector<8x128xf32>
    %32 = arith.negf %31 : vector<8x128xf32>
    %33 = math.exp %32 : vector<8x128xf32>
    %cst_18 = arith.constant 1.000000e+00 : f32
    %34 = vector.broadcast %cst_18 : f32 to vector<8x128xf32>
    %35 = arith.addf %34, %33 : vector<8x128xf32>
    %36 = arith.divf %34, %35 : vector<8x128xf32>
    %37 = arith.mulf %18, %24 : vector<8x128xf32>
    %38 = arith.mulf %11, %30 : vector<8x128xf32>
    %39 = arith.addf %37, %38 : vector<8x128xf32>
    %40 = math.tanh %39 : vector<8x128xf32>
    %41 = arith.mulf %40, %36 : vector<8x128xf32>
    %c1_i32 = arith.constant 1 : i32
    %42 = arith.index_cast %c1_i32 : i32 to index
    %c0_19 = arith.constant 0 : index
    %c0_20 = arith.constant 0 : index
    %43 = vector.load %arg8[%42, %c0_19, %c0_20] : memref<8x8x512xf32, #tpu.memory_space<vmem>>, vector<1x8x512xf32>
    %44 = vector.shape_cast %43 : vector<1x8x512xf32> to vector<8x512xf32>
    %cst_21 = arith.constant dense<0.000000e+00> : vector<8x512xf32>
    %45 = tpu.matmul %41, %9, %cst_21 {dimension_numbers = #tpu.dot_dimension_numbers<[1], [0], [0], [1], [0, 0, 1, 1], [], []>} : vector<8x128xf32>, vector<128x512xf32>, vector<8x512xf32> -> vector<8x512xf32>
    %46 = arith.addf %44, %45 : vector<8x512xf32>
    %47 = vector.extract_strided_slice %46 {offsets = [0, 0], sizes = [8, 128], strides = [1, 1]} : vector<8x512xf32> to vector<8x128xf32>
    %48 = math.tanh %47 : vector<8x128xf32>
    %49 = vector.extract_strided_slice %46 {offsets = [0, 128], sizes = [8, 128], strides = [1, 1]} : vector<8x512xf32> to vector<8x128xf32>
    %50 = arith.negf %49 : vector<8x128xf32>
    %51 = math.exp %50 : vector<8x128xf32>
    %cst_22 = arith.constant 1.000000e+00 : f32
    %52 = vector.broadcast %cst_22 : f32 to vector<8x128xf32>
    %53 = arith.addf %52, %51 : vector<8x128xf32>
    %54 = arith.divf %52, %53 : vector<8x128xf32>
    %55 = vector.extract_strided_slice %46 {offsets = [0, 256], sizes = [8, 128], strides = [1, 1]} : vector<8x512xf32> to vector<8x128xf32>
    %56 = arith.negf %55 : vector<8x128xf32>
    %57 = math.exp %56 : vector<8x128xf32>
    %cst_23 = arith.constant 1.000000e+00 : f32
    %58 = vector.broadcast %cst_23 : f32 to vector<8x128xf32>
    %59 = arith.addf %58, %57 : vector<8x128xf32>
    %60 = arith.divf %58, %59 : vector<8x128xf32>
    %61 = vector.extract_strided_slice %46 {offsets = [0, 384], sizes = [8, 128], strides = [1, 1]} : vector<8x512xf32> to vector<8x128xf32>
    %62 = arith.negf %61 : vector<8x128xf32>
    %63 = math.exp %62 : vector<8x128xf32>
    %cst_24 = arith.constant 1.000000e+00 : f32
    %64 = vector.broadcast %cst_24 : f32 to vector<8x128xf32>
    %65 = arith.addf %64, %63 : vector<8x128xf32>
    %66 = arith.divf %64, %65 : vector<8x128xf32>
    %67 = arith.mulf %48, %54 : vector<8x128xf32>
    %68 = arith.mulf %39, %60 : vector<8x128xf32>
    %69 = arith.addf %67, %68 : vector<8x128xf32>
    %70 = math.tanh %69 : vector<8x128xf32>
    %71 = arith.mulf %70, %66 : vector<8x128xf32>
    %c2_i32 = arith.constant 2 : i32
    %72 = arith.index_cast %c2_i32 : i32 to index
    %c0_25 = arith.constant 0 : index
    %c0_26 = arith.constant 0 : index
    %73 = vector.load %arg8[%72, %c0_25, %c0_26] : memref<8x8x512xf32, #tpu.memory_space<vmem>>, vector<1x8x512xf32>
    %74 = vector.shape_cast %73 : vector<1x8x512xf32> to vector<8x512xf32>
    %cst_27 = arith.constant dense<0.000000e+00> : vector<8x512xf32>
    %75 = tpu.matmul %71, %9, %cst_27 {dimension_numbers = #tpu.dot_dimension_numbers<[1], [0], [0], [1], [0, 0, 1, 1], [], []>} : vector<8x128xf32>, vector<128x512xf32>, vector<8x512xf32> -> vector<8x512xf32>
    %76 = arith.addf %74, %75 : vector<8x512xf32>
    %77 = vector.extract_strided_slice %76 {offsets = [0, 0], sizes = [8, 128], strides = [1, 1]} : vector<8x512xf32> to vector<8x128xf32>
    %78 = math.tanh %77 : vector<8x128xf32>
    %79 = vector.extract_strided_slice %76 {offsets = [0, 128], sizes = [8, 128], strides = [1, 1]} : vector<8x512xf32> to vector<8x128xf32>
    %80 = arith.negf %79 : vector<8x128xf32>
    %81 = math.exp %80 : vector<8x128xf32>
    %cst_28 = arith.constant 1.000000e+00 : f32
    %82 = vector.broadcast %cst_28 : f32 to vector<8x128xf32>
    %83 = arith.addf %82, %81 : vector<8x128xf32>
    %84 = arith.divf %82, %83 : vector<8x128xf32>
    %85 = vector.extract_strided_slice %76 {offsets = [0, 256], sizes = [8, 128], strides = [1, 1]} : vector<8x512xf32> to vector<8x128xf32>
    %86 = arith.negf %85 : vector<8x128xf32>
    %87 = math.exp %86 : vector<8x128xf32>
    %cst_29 = arith.constant 1.000000e+00 : f32
    %88 = vector.broadcast %cst_29 : f32 to vector<8x128xf32>
    %89 = arith.addf %88, %87 : vector<8x128xf32>
    %90 = arith.divf %88, %89 : vector<8x128xf32>
    %91 = vector.extract_strided_slice %76 {offsets = [0, 384], sizes = [8, 128], strides = [1, 1]} : vector<8x512xf32> to vector<8x128xf32>
    %92 = arith.negf %91 : vector<8x128xf32>
    %93 = math.exp %92 : vector<8x128xf32>
    %cst_30 = arith.constant 1.000000e+00 : f32
    %94 = vector.broadcast %cst_30 : f32 to vector<8x128xf32>
    %95 = arith.addf %94, %93 : vector<8x128xf32>
    %96 = arith.divf %94, %95 : vector<8x128xf32>
    %97 = arith.mulf %78, %84 : vector<8x128xf32>
    %98 = arith.mulf %69, %90 : vector<8x128xf32>
    %99 = arith.addf %97, %98 : vector<8x128xf32>
    %100 = math.tanh %99 : vector<8x128xf32>
    %101 = arith.mulf %100, %96 : vector<8x128xf32>
    %c3_i32 = arith.constant 3 : i32
    %102 = arith.index_cast %c3_i32 : i32 to index
    %c0_31 = arith.constant 0 : index
    %c0_32 = arith.constant 0 : index
    %103 = vector.load %arg8[%102, %c0_31, %c0_32] : memref<8x8x512xf32, #tpu.memory_space<vmem>>, vector<1x8x512xf32>
    %104 = vector.shape_cast %103 : vector<1x8x512xf32> to vector<8x512xf32>
    %cst_33 = arith.constant dense<0.000000e+00> : vector<8x512xf32>
    %105 = tpu.matmul %101, %9, %cst_33 {dimension_numbers = #tpu.dot_dimension_numbers<[1], [0], [0], [1], [0, 0, 1, 1], [], []>} : vector<8x128xf32>, vector<128x512xf32>, vector<8x512xf32> -> vector<8x512xf32>
    %106 = arith.addf %104, %105 : vector<8x512xf32>
    %107 = vector.extract_strided_slice %106 {offsets = [0, 0], sizes = [8, 128], strides = [1, 1]} : vector<8x512xf32> to vector<8x128xf32>
    %108 = math.tanh %107 : vector<8x128xf32>
    %109 = vector.extract_strided_slice %106 {offsets = [0, 128], sizes = [8, 128], strides = [1, 1]} : vector<8x512xf32> to vector<8x128xf32>
    %110 = arith.negf %109 : vector<8x128xf32>
    %111 = math.exp %110 : vector<8x128xf32>
    %cst_34 = arith.constant 1.000000e+00 : f32
    %112 = vector.broadcast %cst_34 : f32 to vector<8x128xf32>
    %113 = arith.addf %112, %111 : vector<8x128xf32>
    %114 = arith.divf %112, %113 : vector<8x128xf32>
    %115 = vector.extract_strided_slice %106 {offsets = [0, 256], sizes = [8, 128], strides = [1, 1]} : vector<8x512xf32> to vector<8x128xf32>
    %116 = arith.negf %115 : vector<8x128xf32>
    %117 = math.exp %116 : vector<8x128xf32>
    %cst_35 = arith.constant 1.000000e+00 : f32
    %118 = vector.broadcast %cst_35 : f32 to vector<8x128xf32>
    %119 = arith.addf %118, %117 : vector<8x128xf32>
    %120 = arith.divf %118, %119 : vector<8x128xf32>
    %121 = vector.extract_strided_slice %106 {offsets = [0, 384], sizes = [8, 128], strides = [1, 1]} : vector<8x512xf32> to vector<8x128xf32>
    %122 = arith.negf %121 : vector<8x128xf32>
    %123 = math.exp %122 : vector<8x128xf32>
    %cst_36 = arith.constant 1.000000e+00 : f32
    %124 = vector.broadcast %cst_36 : f32 to vector<8x128xf32>
    %125 = arith.addf %124, %123 : vector<8x128xf32>
    %126 = arith.divf %124, %125 : vector<8x128xf32>
    %127 = arith.mulf %108, %114 : vector<8x128xf32>
    %128 = arith.mulf %99, %120 : vector<8x128xf32>
    %129 = arith.addf %127, %128 : vector<8x128xf32>
    %130 = math.tanh %129 : vector<8x128xf32>
    %131 = arith.mulf %130, %126 : vector<8x128xf32>
    %c4_i32 = arith.constant 4 : i32
    %132 = arith.index_cast %c4_i32 : i32 to index
    %c0_37 = arith.constant 0 : index
    %c0_38 = arith.constant 0 : index
    %133 = vector.load %arg8[%132, %c0_37, %c0_38] : memref<8x8x512xf32, #tpu.memory_space<vmem>>, vector<1x8x512xf32>
    %134 = vector.shape_cast %133 : vector<1x8x512xf32> to vector<8x512xf32>
    %cst_39 = arith.constant dense<0.000000e+00> : vector<8x512xf32>
    %135 = tpu.matmul %131, %9, %cst_39 {dimension_numbers = #tpu.dot_dimension_numbers<[1], [0], [0], [1], [0, 0, 1, 1], [], []>} : vector<8x128xf32>, vector<128x512xf32>, vector<8x512xf32> -> vector<8x512xf32>
    %136 = arith.addf %134, %135 : vector<8x512xf32>
    %137 = vector.extract_strided_slice %136 {offsets = [0, 0], sizes = [8, 128], strides = [1, 1]} : vector<8x512xf32> to vector<8x128xf32>
    %138 = math.tanh %137 : vector<8x128xf32>
    %139 = vector.extract_strided_slice %136 {offsets = [0, 128], sizes = [8, 128], strides = [1, 1]} : vector<8x512xf32> to vector<8x128xf32>
    %140 = arith.negf %139 : vector<8x128xf32>
    %141 = math.exp %140 : vector<8x128xf32>
    %cst_40 = arith.constant 1.000000e+00 : f32
    %142 = vector.broadcast %cst_40 : f32 to vector<8x128xf32>
    %143 = arith.addf %142, %141 : vector<8x128xf32>
    %144 = arith.divf %142, %143 : vector<8x128xf32>
    %145 = vector.extract_strided_slice %136 {offsets = [0, 256], sizes = [8, 128], strides = [1, 1]} : vector<8x512xf32> to vector<8x128xf32>
    %146 = arith.negf %145 : vector<8x128xf32>
    %147 = math.exp %146 : vector<8x128xf32>
    %cst_41 = arith.constant 1.000000e+00 : f32
    %148 = vector.broadcast %cst_41 : f32 to vector<8x128xf32>
    %149 = arith.addf %148, %147 : vector<8x128xf32>
    %150 = arith.divf %148, %149 : vector<8x128xf32>
    %151 = vector.extract_strided_slice %136 {offsets = [0, 384], sizes = [8, 128], strides = [1, 1]} : vector<8x512xf32> to vector<8x128xf32>
    %152 = arith.negf %151 : vector<8x128xf32>
    %153 = math.exp %152 : vector<8x128xf32>
    %cst_42 = arith.constant 1.000000e+00 : f32
    %154 = vector.broadcast %cst_42 : f32 to vector<8x128xf32>
    %155 = arith.addf %154, %153 : vector<8x128xf32>
    %156 = arith.divf %154, %155 : vector<8x128xf32>
    %157 = arith.mulf %138, %144 : vector<8x128xf32>
    %158 = arith.mulf %129, %150 : vector<8x128xf32>
    %159 = arith.addf %157, %158 : vector<8x128xf32>
    %160 = math.tanh %159 : vector<8x128xf32>
    %161 = arith.mulf %160, %156 : vector<8x128xf32>
    %c5_i32 = arith.constant 5 : i32
    %162 = arith.index_cast %c5_i32 : i32 to index
    %c0_43 = arith.constant 0 : index
    %c0_44 = arith.constant 0 : index
    %163 = vector.load %arg8[%162, %c0_43, %c0_44] : memref<8x8x512xf32, #tpu.memory_space<vmem>>, vector<1x8x512xf32>
    %164 = vector.shape_cast %163 : vector<1x8x512xf32> to vector<8x512xf32>
    %cst_45 = arith.constant dense<0.000000e+00> : vector<8x512xf32>
    %165 = tpu.matmul %161, %9, %cst_45 {dimension_numbers = #tpu.dot_dimension_numbers<[1], [0], [0], [1], [0, 0, 1, 1], [], []>} : vector<8x128xf32>, vector<128x512xf32>, vector<8x512xf32> -> vector<8x512xf32>
    %166 = arith.addf %164, %165 : vector<8x512xf32>
    %167 = vector.extract_strided_slice %166 {offsets = [0, 0], sizes = [8, 128], strides = [1, 1]} : vector<8x512xf32> to vector<8x128xf32>
    %168 = math.tanh %167 : vector<8x128xf32>
    %169 = vector.extract_strided_slice %166 {offsets = [0, 128], sizes = [8, 128], strides = [1, 1]} : vector<8x512xf32> to vector<8x128xf32>
    %170 = arith.negf %169 : vector<8x128xf32>
    %171 = math.exp %170 : vector<8x128xf32>
    %cst_46 = arith.constant 1.000000e+00 : f32
    %172 = vector.broadcast %cst_46 : f32 to vector<8x128xf32>
    %173 = arith.addf %172, %171 : vector<8x128xf32>
    %174 = arith.divf %172, %173 : vector<8x128xf32>
    %175 = vector.extract_strided_slice %166 {offsets = [0, 256], sizes = [8, 128], strides = [1, 1]} : vector<8x512xf32> to vector<8x128xf32>
    %176 = arith.negf %175 : vector<8x128xf32>
    %177 = math.exp %176 : vector<8x128xf32>
    %cst_47 = arith.constant 1.000000e+00 : f32
    %178 = vector.broadcast %cst_47 : f32 to vector<8x128xf32>
    %179 = arith.addf %178, %177 : vector<8x128xf32>
    %180 = arith.divf %178, %179 : vector<8x128xf32>
    %181 = vector.extract_strided_slice %166 {offsets = [0, 384], sizes = [8, 128], strides = [1, 1]} : vector<8x512xf32> to vector<8x128xf32>
    %182 = arith.negf %181 : vector<8x128xf32>
    %183 = math.exp %182 : vector<8x128xf32>
    %cst_48 = arith.constant 1.000000e+00 : f32
    %184 = vector.broadcast %cst_48 : f32 to vector<8x128xf32>
    %185 = arith.addf %184, %183 : vector<8x128xf32>
    %186 = arith.divf %184, %185 : vector<8x128xf32>
    %187 = arith.mulf %168, %174 : vector<8x128xf32>
    %188 = arith.mulf %159, %180 : vector<8x128xf32>
    %189 = arith.addf %187, %188 : vector<8x128xf32>
    %190 = math.tanh %189 : vector<8x128xf32>
    %191 = arith.mulf %190, %186 : vector<8x128xf32>
    %c6_i32 = arith.constant 6 : i32
    %192 = arith.index_cast %c6_i32 : i32 to index
    %c0_49 = arith.constant 0 : index
    %c0_50 = arith.constant 0 : index
    %193 = vector.load %arg8[%192, %c0_49, %c0_50] : memref<8x8x512xf32, #tpu.memory_space<vmem>>, vector<1x8x512xf32>
    %194 = vector.shape_cast %193 : vector<1x8x512xf32> to vector<8x512xf32>
    %cst_51 = arith.constant dense<0.000000e+00> : vector<8x512xf32>
    %195 = tpu.matmul %191, %9, %cst_51 {dimension_numbers = #tpu.dot_dimension_numbers<[1], [0], [0], [1], [0, 0, 1, 1], [], []>} : vector<8x128xf32>, vector<128x512xf32>, vector<8x512xf32> -> vector<8x512xf32>
    %196 = arith.addf %194, %195 : vector<8x512xf32>
    %197 = vector.extract_strided_slice %196 {offsets = [0, 0], sizes = [8, 128], strides = [1, 1]} : vector<8x512xf32> to vector<8x128xf32>
    %198 = math.tanh %197 : vector<8x128xf32>
    %199 = vector.extract_strided_slice %196 {offsets = [0, 128], sizes = [8, 128], strides = [1, 1]} : vector<8x512xf32> to vector<8x128xf32>
    %200 = arith.negf %199 : vector<8x128xf32>
    %201 = math.exp %200 : vector<8x128xf32>
    %cst_52 = arith.constant 1.000000e+00 : f32
    %202 = vector.broadcast %cst_52 : f32 to vector<8x128xf32>
    %203 = arith.addf %202, %201 : vector<8x128xf32>
    %204 = arith.divf %202, %203 : vector<8x128xf32>
    %205 = vector.extract_strided_slice %196 {offsets = [0, 256], sizes = [8, 128], strides = [1, 1]} : vector<8x512xf32> to vector<8x128xf32>
    %206 = arith.negf %205 : vector<8x128xf32>
    %207 = math.exp %206 : vector<8x128xf32>
    %cst_53 = arith.constant 1.000000e+00 : f32
    %208 = vector.broadcast %cst_53 : f32 to vector<8x128xf32>
    %209 = arith.addf %208, %207 : vector<8x128xf32>
    %210 = arith.divf %208, %209 : vector<8x128xf32>
    %211 = vector.extract_strided_slice %196 {offsets = [0, 384], sizes = [8, 128], strides = [1, 1]} : vector<8x512xf32> to vector<8x128xf32>
    %212 = arith.negf %211 : vector<8x128xf32>
    %213 = math.exp %212 : vector<8x128xf32>
    %cst_54 = arith.constant 1.000000e+00 : f32
    %214 = vector.broadcast %cst_54 : f32 to vector<8x128xf32>
    %215 = arith.addf %214, %213 : vector<8x128xf32>
    %216 = arith.divf %214, %215 : vector<8x128xf32>
    %217 = arith.mulf %198, %204 : vector<8x128xf32>
    %218 = arith.mulf %189, %210 : vector<8x128xf32>
    %219 = arith.addf %217, %218 : vector<8x128xf32>
    %220 = math.tanh %219 : vector<8x128xf32>
    %221 = arith.mulf %220, %216 : vector<8x128xf32>
    %c7_i32 = arith.constant 7 : i32
    %222 = arith.index_cast %c7_i32 : i32 to index
    %c0_55 = arith.constant 0 : index
    %c0_56 = arith.constant 0 : index
    %223 = vector.load %arg8[%222, %c0_55, %c0_56] : memref<8x8x512xf32, #tpu.memory_space<vmem>>, vector<1x8x512xf32>
    %224 = vector.shape_cast %223 : vector<1x8x512xf32> to vector<8x512xf32>
    %cst_57 = arith.constant dense<0.000000e+00> : vector<8x512xf32>
    %225 = tpu.matmul %221, %9, %cst_57 {dimension_numbers = #tpu.dot_dimension_numbers<[1], [0], [0], [1], [0, 0, 1, 1], [], []>} : vector<8x128xf32>, vector<128x512xf32>, vector<8x512xf32> -> vector<8x512xf32>
    %226 = arith.addf %224, %225 : vector<8x512xf32>
    %227 = vector.extract_strided_slice %226 {offsets = [0, 0], sizes = [8, 128], strides = [1, 1]} : vector<8x512xf32> to vector<8x128xf32>
    %228 = math.tanh %227 : vector<8x128xf32>
    %229 = vector.extract_strided_slice %226 {offsets = [0, 128], sizes = [8, 128], strides = [1, 1]} : vector<8x512xf32> to vector<8x128xf32>
    %230 = arith.negf %229 : vector<8x128xf32>
    %231 = math.exp %230 : vector<8x128xf32>
    %cst_58 = arith.constant 1.000000e+00 : f32
    %232 = vector.broadcast %cst_58 : f32 to vector<8x128xf32>
    %233 = arith.addf %232, %231 : vector<8x128xf32>
    %234 = arith.divf %232, %233 : vector<8x128xf32>
    %235 = vector.extract_strided_slice %226 {offsets = [0, 256], sizes = [8, 128], strides = [1, 1]} : vector<8x512xf32> to vector<8x128xf32>
    %236 = arith.negf %235 : vector<8x128xf32>
    %237 = math.exp %236 : vector<8x128xf32>
    %cst_59 = arith.constant 1.000000e+00 : f32
    %238 = vector.broadcast %cst_59 : f32 to vector<8x128xf32>
    %239 = arith.addf %238, %237 : vector<8x128xf32>
    %240 = arith.divf %238, %239 : vector<8x128xf32>
    %241 = vector.extract_strided_slice %226 {offsets = [0, 384], sizes = [8, 128], strides = [1, 1]} : vector<8x512xf32> to vector<8x128xf32>
    %242 = arith.negf %241 : vector<8x128xf32>
    %243 = math.exp %242 : vector<8x128xf32>
    %cst_60 = arith.constant 1.000000e+00 : f32
    %244 = vector.broadcast %cst_60 : f32 to vector<8x128xf32>
    %245 = arith.addf %244, %243 : vector<8x128xf32>
    %246 = arith.divf %244, %245 : vector<8x128xf32>
    %247 = arith.mulf %228, %234 : vector<8x128xf32>
    %248 = arith.mulf %219, %240 : vector<8x128xf32>
    %249 = arith.addf %247, %248 : vector<8x128xf32>
    %250 = math.tanh %249 : vector<8x128xf32>
    %251 = arith.mulf %250, %246 : vector<8x128xf32>
    %c8_i32 = arith.constant 8 : i32
    %c0_61 = arith.constant 0 : index
    %c0_62 = arith.constant 0 : index
    %252 = vector.load %arg5[%c0_61, %c0_62] : memref<128x128xf32, #tpu.memory_space<vmem>>, vector<128x128xf32>
    %cst_63 = arith.constant dense<0.000000e+00> : vector<8x128xf32>
    %253 = tpu.matmul %251, %252, %cst_63 {dimension_numbers = #tpu.dot_dimension_numbers<[1], [0], [0], [1], [0, 0, 1, 1], [], []>} : vector<8x128xf32>, vector<128x128xf32>, vector<8x128xf32> -> vector<8x128xf32>
    %c0_64 = arith.constant 0 : index
    %c0_65 = arith.constant 0 : index
    %254 = vector.load %arg6[%c0_64, %c0_65] : memref<1x128xf32, #tpu.memory_space<vmem>>, vector<1x128xf32>
    %255 = vector.broadcast %254 : vector<1x128xf32> to vector<8x128xf32>
    %256 = arith.addf %253, %255 : vector<8x128xf32>
    %c0_66 = arith.constant 0 : index
    %c0_67 = arith.constant 0 : index
    %257 = vector.load %arg7[%c0_66, %c0_67] : memref<8x128xf32, #tpu.memory_space<vmem>>, vector<8x128xf32>
    tpu.vector_store %arg7[%c0_66, %c0_67], %256 {strides = array<i32>} : memref<8x128xf32, #tpu.memory_space<vmem>>, vector<8x128xf32>,
    return
  }
  func.func @transform_0(%arg0: i32) -> (i32, i32, i32) {
    %c0_i32 = arith.constant 0 : i32
    %c0_i32_0 = arith.constant 0 : i32
    %c0_i32_1 = arith.constant 0 : i32
    return %c0_i32, %arg0, %c0_i32_0 : i32, i32, i32
  }
  func.func @transform_1(%arg0: i32) -> (i32, i32) {
    %c0_i32 = arith.constant 0 : i32
    %c0_i32_0 = arith.constant 0 : i32
    %c0_i32_1 = arith.constant 0 : i32
    return %c0_i32, %c0_i32_0 : i32, i32
  }
  func.func @transform_2(%arg0: i32) -> (i32, i32) {
    %c0_i32 = arith.constant 0 : i32
    %c0_i32_0 = arith.constant 0 : i32
    %c0_i32_1 = arith.constant 0 : i32
    return %c0_i32, %c0_i32_0 : i32, i32
  }
  func.func @transform_3(%arg0: i32) -> (i32, i32) {
    %c0_i32 = arith.constant 0 : i32
    %c0_i32_0 = arith.constant 0 : i32
    %c0_i32_1 = arith.constant 0 : i32
    return %c0_i32, %c0_i32_0 : i32, i32
  }
  func.func @transform_4(%arg0: i32) -> (i32, i32) {
    %c0_i32 = arith.constant 0 : i32
    %c0_i32_0 = arith.constant 0 : i32
    %c0_i32_1 = arith.constant 0 : i32
    return %c0_i32, %c0_i32_0 : i32, i32
  }
  func.func @transform_5(%arg0: i32) -> (i32, i32) {
    %c0_i32 = arith.constant 0 : i32
    %c0_i32_0 = arith.constant 0 : i32
    %c0_i32_1 = arith.constant 0 : i32
    return %c0_i32, %c0_i32_0 : i32, i32
  }
  func.func @transform_6(%arg0: i32) -> (i32, i32) {
    %c0_i32 = arith.constant 0 : i32
    %c0_i32_0 = arith.constant 0 : i32
    return %arg0, %c0_i32 : i32, i32
  }
}

</mosaic_0001>

<bundles_post_ra>
// kernel: tpu_custom_call.1
= control target key start
LH: loop header
LB: loop body
LE: loop exit
PB: predicated region body
PF: predicated region fallthrough
CT: control target
= control target key end

     0   :  { %11 = vsyncpa [#allocation4], 0  ;;  %s3430_s0 = inlined_call_operand.hbm [shape: f32[8,8,16], index: 0, kind: input, shape index: {}]   ;;  %s3431_s1 = inlined_call_operand.hbm [shape: f32[16,512], index: 1, kind: input, shape index: {}]   ;;  %s3432_s2 = inlined_call_operand.hbm [shape: f32[128,512], index: 2, kind: input, shape index: {}]   ;;  %s3433_s3 = inlined_call_operand.vmem [shape: f32[1,512], index: 3, kind: input, shape index: {}]   ;;  %s3434_s4 = inlined_call_operand.hbm [shape: f32[128,128], index: 4, kind: input, shape index: {}]   ;;  %s3435_s5 = inlined_call_operand.vmem [shape: f32[1,128], index: 5, kind: input, shape index: {}]   ;;  %s3436_s6 = inlined_call_operand.hbm [shape: f32[8,128], index: 6, kind: output, shape index: {}]  }
   0x1   :  { %12 = vsyncpa [#allocation7], 0 }
   0x2   :  { %13 = vsyncpa [#allocation10], 0 }
   0x3   :  { %14 = vsyncpa [#allocation5], 0  ;;  %s2378_s21 = smov [#allocation6]  }
   0x4   :  { %s32_s22 = sshll.u32 %s2378_s21, 4  ;;  %s33_s22 = int_to_ptr.vmem [resolvable:$true] %s32_s22 }
   0x5   :  { %s2278_s23 = scalar_lea.vmem %s33_s22, 1024  ;;  %p2283_p1 = scmp.lt.s32.totalorder %s33_s22, %s33_s22 }
   0x6   :  { %p2279_p0 = scmp.ne.s32.totalorder %s33_s22, %s2278_s23  ;;  %p2284_p2 = scmp.lt.s32.totalorder %s2278_s23, %s2278_s23 }
   0x8   :  { %p2285_p3 = por %p2284_p2, %p2283_p1 }
   0xa   :  { %p2286_p4 = pnand %p2285_p3, %p2279_p0 }
   0xc   :  { %2289 = shalt.err (!%p2286_p4)
}
   0xd   :  { %s2379_s24 = smov 512   ;;  %s2380_s25 = smov 32  }
   0xe   :  { %38 = dma.hbm_to_vmem [thread:$0]  %s3431_s1, 1024, %s33_s22, [#allocation7], %s2379_s24, %s2379_s24, %s2380_s25  }
   0xf   :  { %s2381_s28 = smov [#allocation3]  }
  0x10   :  { %s20_s29 = sshll.u32 %s2381_s28, 4  ;;  %s21_s29 = int_to_ptr.vmem [resolvable:$true] %s20_s29 }
  0x11   :  { %s2298_s30 = scalar_lea.vmem %s21_s29, 1024  ;;  %p2303_p6 = scmp.lt.s32.totalorder %s21_s29, %s21_s29 }
  0x12   :  { %p2299_p5 = scmp.ne.s32.totalorder %s21_s29, %s2298_s30  ;;  %p2304_p7 = scmp.lt.s32.totalorder %s2298_s30, %s2298_s30 }
  0x14   :  { %p2305_p8 = por %p2304_p7, %p2303_p6 }
  0x16   :  { %p2306_p9 = pnand %p2305_p8, %p2299_p5 }
  0x18   :  { %2309 = shalt.err (!%p2306_p9)
}
  0x19   :  { %s2382_s7 = smov 128   ;;  %s2383_s8 = smov 8  }
  0x1a   :  { %26 = dma.hbm_to_vmem [thread:$0]  %s3430_s0, 1024, %s21_s29, [#allocation4], %s2382_s7, %s2382_s7, %s2383_s8  }
  0x1b   :  { %s2384_s11 = smov [#allocation8]   ;;  %s2385_s13 = smov [#allocation9]  }
  0x1c   :  { %s44_s12 = sshll.u32 %s2384_s11, 4  ;;  %s58_s1 = sshll.u32 %s2385_s13, 4  ;;  %s45_s12 = int_to_ptr.vmem [resolvable:$true] %s44_s12  ;;  %s59_s1 = int_to_ptr.vmem [resolvable:$true] %s58_s1 }
  0x1d   :  { %s2318_s14 = scalar_lea.vmem %s45_s12, 8192  ;;  %p2323_p11 = scmp.lt.s32.totalorder %s45_s12, %s45_s12 }
  0x1e   :  { %p2319_p10 = scmp.ne.s32.totalorder %s45_s12, %s2318_s14  ;;  %p2324_p12 = scmp.lt.s32.totalorder %s2318_s14, %s2318_s14 }
  0x20   :  { %p2325_p13 = por %p2324_p12, %p2323_p11 }
  0x22   :  { %p2326_p0 = pnand %p2325_p13, %p2319_p10 }
  0x24   :  { %2329 = shalt.err (!%p2326_p0)
}
  0x25   :  { %50 = dma.hbm_to_vmem [thread:$0]  %s3432_s2, 8192, %s45_s12, [#allocation7], %s2379_s24, %s2379_s24, %s2380_s25  }
  0x26   :  { %s2338_s0 = scalar_lea.vmem %s59_s1, 2048  ;;  %p2343_p2 = scmp.lt.s32.totalorder %s59_s1, %s59_s1 }
  0x27   :  { %p2339_p1 = scmp.ne.s32.totalorder %s59_s1, %s2338_s0  ;;  %p2344_p3 = scmp.lt.s32.totalorder %s2338_s0, %s2338_s0 }
  0x29   :  { %p2345_p4 = por %p2344_p3, %p2343_p2 }
  0x2b   :  { %p2346_p5 = pnand %p2345_p4, %p2339_p1 }
  0x2d   :  { %2349 = shalt.err (!%p2346_p5)
}
  0x2e   :  { %64 = dma.hbm_to_vmem [thread:$0]  %s3434_s4, 2048, %s59_s1, [#allocation10], %s2382_s7, %s2382_s7, %s2383_s8  }
  0x2f   :  { %2370 = dma.done.wait [#allocation4], 1024  }
  0x30   :  { %2371 = vsyncadd [#allocation4], 4294966272 }
  0x31   :  { %2372 = dma.done.wait [#allocation7], 9216  }
  0x32   :  { %2373 = vsyncadd [#allocation7], 4294958080 }
  0x33   :  { %2374 = dma.done.wait [#allocation10], 2048  }
  0x34   :  { %2375 = vsyncadd [#allocation10], 4294965248  ;;  %v3437_v0 = vmov 0.0   ;;  %v92_v1 = vld [vmem:[#allocation6 + $0x28] sm:$0xff]  ;;  %v94_v2 = vld [vmem:[#allocation6 + $0x38] sm:$0xff]  ;;  %vm117_vm0 = vcmask 130048  }
  0x35   :  { %206 = vmatprep.mubr.f32.mxu0 %v3437_v0  ;;  %319 = vmatprep.mubr.f32.mxu1 %v3437_v0  ;;  %v91_v3 = vld [vmem:[#allocation6 + $0x20] sm:$0xff]  ;;  %v93_v4 = vld [vmem:[#allocation6 + $0x30] sm:$0xff]  ;;  %v88_v5 = vld [vmem:[#allocation6 + $0x8] sm:$0xff]  ;;  %vm2387_vm1 = vmmov 0   ;;  %s2388_s20 = smov [#allocation11]  }
  0x36   :  { %170 = vmatprep.subr.mxu0 %v92_v1  ;;  %283 = vmatprep.subr.mxu1 %v94_v2  ;;  %v90_v6 = vld [vmem:[#allocation6 + $0x18] sm:$0xff]  ;;  %v87_v7 = vld [vmem:[#allocation6] sm:$0xff]  ;;  %v89_v8 = vld [vmem:[#allocation6 + $0x10] sm:$0xff]  ;;  %s1963_s21 = sshll.u32 %s2388_s20, 4  ;;  %s1964_s21 = int_to_ptr.vmem [resolvable:$true] %s1963_s21 }
  0x37   :  { %171 = vmatpush1.msra.mxu0 %v91_v3  ;;  %284 = vmatpush1.msra.mxu1 %v93_v4  ;;  %v79_v9 = vld [vmem:[#allocation3] sm:$0xff]  ;;  %v2444_v10 = vld [vmem:[#allocation8 + $0x1e8] sm:$0xff]  ;;  %v2446_v11 = vld [vmem:[#allocation8 + $0x1f8] sm:$0xff]  ;;  %s2350_s22 = scalar_lea.vmem %s1964_s21, 128  ;;  %p2355_p7 = scmp.lt.s32.totalorder %s1964_s21, %s1964_s21 }
  0x38   :  { %172 = vmatprep.subr.mxu0 %v88_v5  ;;  %285 = vmatprep.subr.mxu1 %v90_v6  ;;  %3529 = vst [vmem:[#allocation16_spill] sm:$0xff] %v2444_v10  ;;  %3530 = vst [vmem:[#allocation17_spill] sm:$0xff] %v2446_v11  ;;  %v2448_v12 = vld [vmem:[#allocation8 + $0x1e0] sm:$0xff]  ;;  %v2450_v13 = vld [vmem:[#allocation8 + $0x1f0] sm:$0xff]  ;;  %p2351_p6 = scmp.ne.s32.totalorder %s1964_s21, %s2350_s22  ;;  %p2356_p8 = scmp.lt.s32.totalorder %s2350_s22, %s2350_s22 }
  0x39   :  { %173 = vmatpush1.msra.mxu0 %v87_v7  ;;  %286 = vmatpush1.msra.mxu1 %v89_v8  ;;  %v2454_v14 = vld [vmem:[#allocation8 + $0x1c8] sm:$0xff]  ;;  %v2456_v15 = vld [vmem:[#allocation8 + $0x1d8] sm:$0xff]  ;;  %v2462_v16 = vld [vmem:[#allocation8 + $0x1c0] sm:$0xff] }
  0x3a   :  { %1974 = vmatmul.mubr.msk.f32.vlgmr.msra.gmra.mxu0 %vm117_vm0, %v79_v9  ;;  %1982 = vmatmul.mubr.msk.f32.vlgmr.msra.gmra.mxu1 %vm117_vm0, %v79_v9  ;;  %v2464_v17 = vld [vmem:[#allocation8 + $0x1d0] sm:$0xff]  ;;  %v80_v18 = vld [vmem:[#allocation3 + $0x8] sm:$0xff]  ;;  %v2472_v20 = vld [vmem:[#allocation8 + $0x1b8] sm:$0xff]  ;;  %p2357_p9 = por %p2356_p8, %p2355_p7 }
  0x3b   :  { %468 = vmatprep.subr.mxu0 %v2444_v10  ;;  %539 = vmatprep.subr.mxu1 %v2446_v11  ;;  %v2470_v19 = vld [vmem:[#allocation8 + $0x1a8] sm:$0xff]  ;;  %v2476_v21 = vld [vmem:[#allocation8 + $0x1a0] sm:$0xff]  ;;  %v2478_v22 = vld [vmem:[#allocation8 + $0x1b0] sm:$0xff] }
  0x3c   :  { %469 = vmatpush1.msra.mxu0 %v2448_v12  ;;  %540 = vmatpush1.msra.mxu1 %v2450_v13  ;;  %v2482_v23 = vld [vmem:[#allocation8 + $0x188] sm:$0xff]  ;;  %v2484_v24 = vld [vmem:[#allocation8 + $0x198] sm:$0xff]  ;;  %v2490_v25 = vld [vmem:[#allocation8 + $0x180] sm:$0xff]  ;;  %p2358_p10 = pnand %p2357_p9, %p2351_p6 }
  0x3d   :  { %470 = vmatprep.subr.mxu0 %v2454_v14  ;;  %541 = vmatprep.subr.mxu1 %v2456_v15  ;;  %v2492_v26 = vld [vmem:[#allocation8 + $0x190] sm:$0xff]  ;;  %v2498_v28 = vld [vmem:[#allocation8 + $0x168] sm:$0xff]  ;;  %v2500_v29 = vld [vmem:[#allocation8 + $0x178] sm:$0xff] }
  0x3e   :  { %212 = vmatprep.mubr.f32.mxu0 %v3437_v0  ;;  %325 = vmatprep.mubr.f32.mxu1 %v3437_v0  ;;  %v81_v27 = vld [vmem:[#allocation3 + $0x10] sm:$0xff]  ;;  %v2504_v30 = vld [vmem:[#allocation8 + $0x160] sm:$0xff]  ;;  %v2510_v32 = vld [vmem:[#allocation8 + $0x148] sm:$0xff] }
  0x3f   :  { %471 = vmatpush1.msra.mxu0 %v2462_v16  ;;  %542 = vmatpush1.msra.mxu1 %v2464_v17  ;;  %v2506_v31 = vld [vmem:[#allocation8 + $0x170] sm:$0xff]  ;;  %v2512_v33 = vld [vmem:[#allocation8 + $0x158] sm:$0xff]  ;;  %v2518_v34 = vld [vmem:[#allocation8 + $0x140] sm:$0xff] }
  0x40   :  { %1975 = vmatmul.mubr.msk.f32.gmra.mxu0 %vm117_vm0, %v80_v18  ;;  %1983 = vmatmul.mubr.msk.f32.gmra.mxu1 %vm117_vm0, %v80_v18  ;;  %v2520_v35 = vld [vmem:[#allocation8 + $0x150] sm:$0xff]  ;;  %v82_v36 = vld [vmem:[#allocation3 + $0x18] sm:$0xff]  ;;  %v2526_v37 = vld [vmem:[#allocation8 + $0x128] sm:$0xff] }
  0x41   :  { %472 = vmatprep.subr.mxu0 %v2470_v19  ;;  %543 = vmatprep.subr.mxu1 %v2472_v20  ;;  %v2528_v38 = vld [vmem:[#allocation8 + $0x138] sm:$0xff]  ;;  %v2532_v39 = vld [vmem:[#allocation8 + $0x120] sm:$0xff]  ;;  %v2534_v40 = vld [vmem:[#allocation8 + $0x130] sm:$0xff] }
  0x42   :  { %473 = vmatpush1.msra.mxu0 %v2476_v21  ;;  %544 = vmatpush1.msra.mxu1 %v2478_v22  ;;  %v2538_v41 = vld [vmem:[#allocation8 + $0x108] sm:$0xff]  ;;  %v2540_v42 = vld [vmem:[#allocation8 + $0x118] sm:$0xff]  ;;  %v2546_v43 = vld [vmem:[#allocation8 + $0x100] sm:$0xff] }
  0x43   :  { %474 = vmatprep.subr.mxu0 %v2482_v23  ;;  %545 = vmatprep.subr.mxu1 %v2484_v24  ;;  %v2548_v44 = vld [vmem:[#allocation8 + $0x110] sm:$0xff]  ;;  %v83_v45 = vld [vmem:[#allocation3 + $0x20] sm:$0xff]  ;;  %v2554_v46 = vld [vmem:[#allocation8 + $0xe8] sm:$0xff] }
  0x44   :  { %218 = vmatprep.mubr.f32.mxu0 %v3437_v0  ;;  %331 = vmatprep.mubr.f32.mxu1 %v3437_v0  ;;  %v2556_v47 = vld [vmem:[#allocation8 + $0xf8] sm:$0xff]  ;;  %v2560_v48 = vld [vmem:[#allocation8 + $0xe0] sm:$0xff]  ;;  %v2562_v49 = vld [vmem:[#allocation8 + $0xf0] sm:$0xff] }
  0x45   :  { %475 = vmatpush1.msra.mxu0 %v2490_v25  ;;  %546 = vmatpush1.msra.mxu1 %v2492_v26  ;;  %v2566_v50 = vld [vmem:[#allocation8 + $0xc8] sm:$0xff]  ;;  %v2568_v51 = vld [vmem:[#allocation8 + $0xd8] sm:$0xff]  ;;  %v2574_v52 = vld [vmem:[#allocation8 + $0xc0] sm:$0xff] }
  0x46   :  { %1976 = vmatmul.mubr.msk.f32.gmra.mxu0 %vm117_vm0, %v81_v27  ;;  %1984 = vmatmul.mubr.msk.f32.gmra.mxu1 %vm117_vm0, %v81_v27  ;;  %v2576_v53 = vld [vmem:[#allocation8 + $0xd0] sm:$0xff]  ;;  %v84_v54 = vld [vmem:[#allocation3 + $0x28] sm:$0xff]  ;;  %v2584_v56 = vld [vmem:[#allocation8 + $0xb8] sm:$0xff] }
  0x47   :  { %476 = vmatprep.subr.mxu0 %v2498_v28  ;;  %547 = vmatprep.subr.mxu1 %v2500_v29  ;;  %v2582_v55 = vld [vmem:[#allocation8 + $0xa8] sm:$0xff]  ;;  %v2588_v57 = vld [vmem:[#allocation8 + $0xa0] sm:$0xff]  ;;  %v2590_v58 = vld [vmem:[#allocation8 + $0xb0] sm:$0xff] }
  0x48   :  { %477 = vmatpush1.msra.mxu0 %v2504_v30  ;;  %548 = vmatpush1.msra.mxu1 %v2506_v31  ;;  %3531 = vst [vmem:[#allocation18_spill] sm:$0xff] %v2590_v58  ;;  %v2594_v59 = vld [vmem:[#allocation8 + $0x88] sm:$0xff]  ;;  %v2596_v60 = vld [vmem:[#allocation8 + $0x98] sm:$0xff]  ;;  %v2602_v61 = vld [vmem:[#allocation8 + $0x80] sm:$0xff] }
  0x49   :  { %478 = vmatprep.subr.mxu0 %v2510_v32  ;;  %549 = vmatprep.subr.mxu1 %v2512_v33  ;;  %3532 = vst [vmem:[#allocation19_spill] sm:$0xff] %v2594_v59  ;;  %3533 = vst [vmem:[#allocation20_spill] sm:$0xff] %v2596_v60  ;;  %v2604_v62 = vld [vmem:[#allocation8 + $0x90] sm:$0xff]  ;;  %v2610_v1 = vld [vmem:[#allocation8 + $0x68] sm:$0xff] }
  0x4a   :  { %224 = vmatprep.mubr.f32.mxu0 %v3437_v0  ;;  %337 = vmatprep.mubr.f32.mxu1 %v3437_v0  ;;  %3534 = vst [vmem:[#allocation21_spill] sm:$0xff] %v2602_v61  ;;  %3535 = vst [vmem:[#allocation22_spill] sm:$0xff] %v2604_v62  ;;  %v85_v63 = vld [vmem:[#allocation3 + $0x30] sm:$0xff]  ;;  %v2612_v2 = vld [vmem:[#allocation8 + $0x78] sm:$0xff] }
  0x4b   :  { %479 = vmatpush1.msra.mxu0 %v2518_v34  ;;  %550 = vmatpush1.msra.mxu1 %v2520_v35  ;;  %3536 = vst [vmem:[#allocation23_spill] sm:$0xff] %v2610_v1  ;;  %3537 = vst [vmem:[#allocation24_spill] sm:$0xff] %v2612_v2  ;;  %v2616_v3 = vld [vmem:[#allocation8 + $0x60] sm:$0xff]  ;;  %v2618_v4 = vld [vmem:[#allocation8 + $0x70] sm:$0xff] }
  0x4c   :  { %1977 = vmatmul.mubr.msk.f32.gmra.mxu0 %vm117_vm0, %v82_v36  ;;  %1985 = vmatmul.mubr.msk.f32.gmra.mxu1 %vm117_vm0, %v82_v36  ;;  %3538 = vst [vmem:[#allocation25_spill] sm:$0xff] %v2616_v3  ;;  %3539 = vst [vmem:[#allocation26_spill] sm:$0xff] %v2618_v4  ;;  %v2622_v5 = vld [vmem:[#allocation8 + $0x48] sm:$0xff]  ;;  %v2624_v6 = vld [vmem:[#allocation8 + $0x58] sm:$0xff] }
  0x4d   :  { %480 = vmatprep.subr.mxu0 %v2526_v37  ;;  %551 = vmatprep.subr.mxu1 %v2528_v38  ;;  %3540 = vst [vmem:[#allocation27_spill] sm:$0xff] %v2622_v5  ;;  %3541 = vst [vmem:[#allocation28_spill] sm:$0xff] %v2624_v6  ;;  %v2630_v7 = vld [vmem:[#allocation8 + $0x40] sm:$0xff]  ;;  %v2632_v8 = vld [vmem:[#allocation8 + $0x50] sm:$0xff] }
  0x4e   :  { %481 = vmatpush1.msra.mxu0 %v2532_v39  ;;  %552 = vmatpush1.msra.mxu1 %v2534_v40  ;;  %3542 = vst [vmem:[#allocation29_spill] sm:$0xff] %v2630_v7  ;;  %3543 = vst [vmem:[#allocation30_spill] sm:$0xff] %v2632_v8  ;;  %v86_v9 = vld [vmem:[#allocation3 + $0x38] sm:$0xff]  ;;  %v2638_v18 = vld [vmem:[#allocation8 + $0x28] sm:$0xff] }
  0x4f   :  { %482 = vmatprep.subr.mxu0 %v2538_v41  ;;  %553 = vmatprep.subr.mxu1 %v2540_v42  ;;  %3544 = vst [vmem:[#allocation31_spill] sm:$0xff] %v2638_v18  ;;  %v2640_v27 = vld [vmem:[#allocation8 + $0x38] sm:$0xff]  ;;  %v2644_v36 = vld [vmem:[#allocation8 + $0x20] sm:$0xff] }
  0x50   :  { %230 = vmatprep.mubr.f32.mxu0 %v3437_v0  ;;  %343 = vmatprep.mubr.f32.mxu1 %v3437_v0  ;;  %3545 = vst [vmem:[#allocation32_spill] sm:$0xff] %v2640_v27  ;;  %3546 = vst [vmem:[#allocation33_spill] sm:$0xff] %v2644_v36 }
  0x51   :  { %483 = vmatpush1.msra.mxu0 %v2546_v43  ;;  %554 = vmatpush1.msra.mxu1 %v2548_v44 }
  0x52   :  { %1978 = vmatmul.mubr.msk.f32.gmra.mxu0 %vm117_vm0, %v83_v45  ;;  %1986 = vmatmul.mubr.msk.f32.gmra.mxu1 %vm117_vm0, %v83_v45  ;;  %v2646_v45 = vld [vmem:[#allocation8 + $0x30] sm:$0xff] }
  0x53   :  { %484 = vmatprep.subr.mxu0 %v2554_v46  ;;  %555 = vmatprep.subr.mxu1 %v2556_v47  ;;  %3547 = vst [vmem:[#allocation34_spill] sm:$0xff] %v2646_v45 }
  0x54   :  { %485 = vmatpush1.msra.mxu0 %v2560_v48  ;;  %556 = vmatpush1.msra.mxu1 %v2562_v49 }
  0x55   :  { %486 = vmatprep.subr.mxu0 %v2566_v50  ;;  %557 = vmatprep.subr.mxu1 %v2568_v51 }
  0x56   :  { %236 = vmatprep.mubr.f32.mxu0 %v3437_v0  ;;  %349 = vmatprep.mubr.f32.mxu1 %v3437_v0 }
  0x57   :  { %487 = vmatpush1.msra.mxu0 %v2574_v52  ;;  %558 = vmatpush1.msra.mxu1 %v2576_v53 }
  0x58   :  { %1979 = vmatmul.mubr.msk.f32.gmra.mxu0 %vm117_vm0, %v84_v54  ;;  %1987 = vmatmul.mubr.msk.f32.gmra.mxu1 %vm117_vm0, %v84_v54  ;;  %v2650_v54 = vld [vmem:[#allocation8 + $0x8] sm:$0xff] }
  0x59   :  { %488 = vmatprep.subr.mxu0 %v2582_v55  ;;  %559 = vmatprep.subr.mxu1 %v2584_v56  ;;  %3548 = vst [vmem:[#allocation35_spill] sm:$0xff] %v2650_v54 }
  0x5a   :  { %489 = vmatpush1.msra.mxu0 %v2588_v57  ;;  %560 = vmatpush1.msra.mxu1 %v2590_v58 }
  0x5b   :  { %490 = vmatprep.subr.mxu0 %v2594_v59  ;;  %561 = vmatprep.subr.mxu1 %v2596_v60 }
  0x5c   :  { %242 = vmatprep.mubr.f32.mxu0 %v3437_v0  ;;  %355 = vmatprep.mubr.f32.mxu1 %v3437_v0 }
  0x5d   :  { %491 = vmatpush1.msra.mxu0 %v2602_v61  ;;  %562 = vmatpush1.msra.mxu1 %v2604_v62 }
  0x5e   :  { %1980 = vmatmul.mubr.msk.f32.gmra.mxu0 %vm117_vm0, %v85_v63  ;;  %1988 = vmatmul.mubr.msk.f32.gmra.mxu1 %vm117_vm0, %v85_v63  ;;  %v2652_v63 = vld [vmem:[#allocation8 + $0x18] sm:$0xff] }
  0x5f   :  { %492 = vmatprep.subr.mxu0 %v2610_v1  ;;  %563 = vmatprep.subr.mxu1 %v2612_v2  ;;  %3549 = vst [vmem:[#allocation36_spill] sm:$0xff] %v2652_v63 }
  0x60   :  { %493 = vmatpush1.msra.mxu0 %v2616_v3  ;;  %564 = vmatpush1.msra.mxu1 %v2618_v4 }
  0x61   :  { %494 = vmatprep.subr.mxu0 %v2622_v5  ;;  %565 = vmatprep.subr.mxu1 %v2624_v6 }
  0x62   :  { %248 = vmatprep.mubr.f32.mxu0 %v3437_v0  ;;  %361 = vmatprep.mubr.f32.mxu1 %v3437_v0  ;;  %v2656_v0 = vld [vmem:[#allocation8] sm:$0xff] }
  0x63   :  { %495 = vmatpush1.msra.mxu0 %v2630_v7  ;;  %566 = vmatpush1.msra.mxu1 %v2632_v8  ;;  %3550 = vst [vmem:[#allocation37_spill] sm:$0xff] %v2656_v0  ;;  %v2660_v8 = vld [vmem:[#allocation8 + $0x10] sm:$0xff] }
  0x64   :  { %1981 = vmatmul.mubr.msk.f32.gmra.mxu0 %vm117_vm0, %v86_v9  ;;  %1989 = vmatmul.mubr.msk.f32.gmra.mxu1 %vm117_vm0, %v86_v9  ;;  %3551 = vst [vmem:[#allocation38_spill] sm:$0xff] %v2660_v8  ;;  %v3552_v9 = vmov 0.0  }
  0x65   :  { %496 = vmatprep.subr.mxu0 %v2638_v18  ;;  %567 = vmatprep.subr.mxu1 %v2640_v27 }
  0x66   :  { %497 = vmatpush1.msra.mxu0 %v2644_v36  ;;  %568 = vmatpush1.msra.mxu1 %v2646_v45 }
  0x67   :  { %498 = vmatprep.subr.mxu0 %v2650_v54  ;;  %569 = vmatprep.subr.mxu1 %v2652_v63 }
  0x68   :  { %499 = vmatpush1.msra.mxu0 %v2656_v0  ;;  %532 = vmatprep.mubr.f32.mxu0 %v3552_v9 }
  0x69   :  { %570 = vmatpush1.msra.mxu1 %v2660_v8  ;;  %603 = vmatprep.mubr.f32.mxu1 %v3552_v9 }
  0x6a   :  { %533 = vmatmul.mubr.f32.vlgmr.msra.gmra.mxu0 %v3552_v9  ;;  %604 = vmatmul.mubr.f32.vlgmr.msra.gmra.mxu1 %v3552_v9 }
  0x6b   :  { %643 = vmatprep.subr.mxu0 %v2444_v10  ;;  %714 = vmatprep.subr.mxu1 %v2446_v11 }
  0x6c   :  { %644 = vmatpush1.msra.mxu0 %v2448_v12  ;;  %715 = vmatpush1.msra.mxu1 %v2450_v13 }
  0x6d   :  { %645 = vmatprep.subr.mxu0 %v2454_v14  ;;  %716 = vmatprep.subr.mxu1 %v2456_v15 }
  0x6e   :  { %646 = vmatpush1.msra.mxu0 %v2462_v16  ;;  %717 = vmatpush1.msra.mxu1 %v2464_v17 }
  0x6f   :  { %647 = vmatprep.subr.mxu0 %v2470_v19  ;;  %718 = vmatprep.subr.mxu1 %v2472_v20 }
  0x70   :  { %648 = vmatpush1.msra.mxu0 %v2476_v21  ;;  %719 = vmatpush1.msra.mxu1 %v2478_v22 }
  0x71   :  { %649 = vmatprep.subr.mxu0 %v2482_v23  ;;  %720 = vmatprep.subr.mxu1 %v2484_v24 }
  0x72   :  { %650 = vmatpush1.msra.mxu0 %v2490_v25  ;;  %721 = vmatpush1.msra.mxu1 %v2492_v26 }
  0x73   :  { %651 = vmatprep.subr.mxu0 %v2498_v28  ;;  %722 = vmatprep.subr.mxu1 %v2500_v29 }
  0x74   :  { %652 = vmatpush1.msra.mxu0 %v2504_v30  ;;  %723 = vmatpush1.msra.mxu1 %v2506_v31 }
  0x75   :  { %653 = vmatprep.subr.mxu0 %v2510_v32  ;;  %724 = vmatprep.subr.mxu1 %v2512_v33 }
  0x76   :  { %654 = vmatpush1.msra.mxu0 %v2518_v34  ;;  %725 = vmatpush1.msra.mxu1 %v2520_v35 }
  0x77   :  { %655 = vmatprep.subr.mxu0 %v2526_v37  ;;  %726 = vmatprep.subr.mxu1 %v2528_v38 }
  0x78   :  { %656 = vmatpush1.msra.mxu0 %v2532_v39  ;;  %727 = vmatpush1.msra.mxu1 %v2534_v40 }
  0x79   :  { %657 = vmatprep.subr.mxu0 %v2538_v41  ;;  %728 = vmatprep.subr.mxu1 %v2540_v42 }
  0x7a   :  { %658 = vmatpush1.msra.mxu0 %v2546_v43  ;;  %729 = vmatpush1.msra.mxu1 %v2548_v44 }
  0x7b   :  { %659 = vmatprep.subr.mxu0 %v2554_v46  ;;  %730 = vmatprep.subr.mxu1 %v2556_v47 }
  0x7c   :  { %660 = vmatpush1.msra.mxu0 %v2560_v48  ;;  %731 = vmatpush1.msra.mxu1 %v2562_v49 }
  0x7d   :  { %661 = vmatprep.subr.mxu0 %v2566_v50  ;;  %732 = vmatprep.subr.mxu1 %v2568_v51 }
  0x7e   :  { %662 = vmatpush1.msra.mxu0 %v2574_v52  ;;  %733 = vmatpush1.msra.mxu1 %v2576_v53 }
  0x7f   :  { %663 = vmatprep.subr.mxu0 %v2582_v55  ;;  %734 = vmatprep.subr.mxu1 %v2584_v56 }
  0x80   :  { %664 = vmatpush1.msra.mxu0 %v2588_v57  ;;  %735 = vmatpush1.msra.mxu1 %v2590_v58 }
  0x81   :  { %665 = vmatprep.subr.mxu0 %v2594_v59  ;;  %736 = vmatprep.subr.mxu1 %v2596_v60  ;;  %v3553_v59 = vld [vmem:[#allocation30_spill] sm:$0xff] }
  0x82   :  { %666 = vmatpush1.msra.mxu0 %v2602_v61  ;;  %737 = vmatpush1.msra.mxu1 %v2604_v62 }
  0x83   :  { %667 = vmatprep.subr.mxu0 %v2610_v1  ;;  %738 = vmatprep.subr.mxu1 %v2612_v2 }
  0x84   :  { %668 = vmatpush1.msra.mxu0 %v2616_v3  ;;  %739 = vmatpush1.msra.mxu1 %v2618_v4 }
  0x85   :  { %669 = vmatprep.subr.mxu0 %v2622_v5  ;;  %740 = vmatprep.subr.mxu1 %v2624_v6 }
  0x86   :  { %670 = vmatpush1.msra.mxu0 %v2630_v7  ;;  %741 = vmatpush1.msra.mxu1 %v3553_v59 }
  0x87   :  { %671 = vmatprep.subr.mxu0 %v2638_v18  ;;  %742 = vmatprep.subr.mxu1 %v2640_v27  ;;  %v97_v27 = vlaneseq }
  0x88   :  { %672 = vmatpush1.msra.mxu0 %v2644_v36  ;;  %743 = vmatpush1.msra.mxu1 %v2646_v45 }
  0x89   :  { %673 = vmatprep.subr.mxu0 %v2650_v54  ;;  %744 = vmatprep.subr.mxu1 %v2652_v63  ;;  %v98_v36 = vshrl.u32 %v97_v27, 7 }
  0x8a   :  { %674 = vmatpush1.msra.mxu0 %v2656_v0  ;;  %707 = vmatprep.mubr.f32.mxu0 %v3552_v9  ;;  %v95_v0 = vld [vmem:[%s3433_s3] sm:$0xf] }
  0x8b   :  { %745 = vmatpush1.msra.mxu1 %v2660_v8  ;;  %778 = vmatprep.mubr.f32.mxu1 %v3552_v9  ;;  %v99_v54 = vsub.s32 0, %v98_v36  ;;  %v107_v63 = vsub.s32 2, %v98_v36  ;;  %v103_v9 = vsub.s32 1, %v98_v36 }
  0x8c   :  { %818 = vmatprep.subr.mxu0 %v2444_v10  ;;  %889 = vmatprep.subr.mxu1 %v2446_v11  ;;  %v111_v10 = vsub.s32 3, %v98_v36 }
  0x8d   :  { %v2749_v7 = vrot.slane %v95_v0, %v99_v54  ;;  %v108_v11 = vrot.slane %v95_v0, %v107_v63  ;;  %v104_v5 = vrot.slane %v95_v0, %v103_v9 }
  0x8e   :  { %v2751_v4 = vrot.slane %v95_v0, %v111_v10 }
  0xfa   :  { %v2738_v18 = vpop.f32.mrf.mxu0  ;;  %v2740_v45 = vpop.f32.mrf.mxu1 }
  0xfc   :  { %v2745_v59 = vpop.f32.mrf.mxu0  ;;  %v2747_v8 = vpop.f32.mrf.mxu1 }
 0x100   :  { %v214_v27 = vpop.f32.mrf.mxu0  ;;  %v327_v6 = vpop.f32.mrf.mxu1 }
 0x101   :  { %v2754_v3 = vadd.f32 %v214_v27, %v2749_v7  ;;  %v2756_v2 = vadd.f32 %v327_v6, %v108_v11 }
 0x102   :  { %v216_v1 = vpop.f32.mrf.mxu0  ;;  %v329_v62 = vpop.f32.mrf.mxu1 }
 0x103   :  { %3554 = vst [vmem:[#allocation39_spill] sm:$0xff] %v2754_v3  ;;  %3555 = vst [vmem:[#allocation40_spill] sm:$0xff] %v2756_v2  ;;  %v2758_v61 = vadd.f32 %v216_v1, %v104_v5  ;;  %v2761_v60 = vadd.f32 %v329_v62, %v2751_v4 }
 0x105   :  { %3556 = vst [vmem:[#allocation41_spill] sm:$0xff] %v2758_v61  ;;  %3557 = vst [vmem:[#allocation42_spill] sm:$0xff] %v2761_v60 }
 0x106   :  { %v220_v36 = vpop.f32.mrf.mxu0  ;;  %v333_v54 = vpop.f32.mrf.mxu1 }
 0x107   :  { %v2764_v63 = vadd.f32 %v220_v36, %v2749_v7  ;;  %v2766_v9 = vadd.f32 %v333_v54, %v108_v11 }
 0x108   :  { %v222_v0 = vpop.f32.mrf.mxu0  ;;  %v335_v10 = vpop.f32.mrf.mxu1 }
 0x109   :  { %3558 = vst [vmem:[#allocation43_spill] sm:$0xff] %v2764_v63  ;;  %3559 = vst [vmem:[#allocation44_spill] sm:$0xff] %v2766_v9  ;;  %v2768_v27 = vadd.f32 %v222_v0, %v104_v5  ;;  %v2771_v6 = vadd.f32 %v335_v10, %v2751_v4 }
 0x10b   :  { %3560 = vst [vmem:[#allocation45_spill] sm:$0xff] %v2768_v27  ;;  %3561 = vst [vmem:[#allocation46_spill] sm:$0xff] %v2771_v6 }
 0x10c   :  { %v226_v3 = vpop.f32.mrf.mxu0  ;;  %v339_v1 = vpop.f32.mrf.mxu1 }
 0x10d   :  { %v2774_v61 = vadd.f32 %v226_v3, %v2749_v7  ;;  %v2776_v62 = vadd.f32 %v339_v1, %v108_v11 }
 0x10e   :  { %v228_v60 = vpop.f32.mrf.mxu0  ;;  %v341_v2 = vpop.f32.mrf.mxu1 }
 0x10f   :  { %3562 = vst [vmem:[#allocation47_spill] sm:$0xff] %v2774_v61  ;;  %3563 = vst [vmem:[#allocation48_spill] sm:$0xff] %v2776_v62  ;;  %v2778_v36 = vadd.f32 %v228_v60, %v104_v5  ;;  %v2781_v54 = vadd.f32 %v341_v2, %v2751_v4 }
 0x111   :  { %3564 = vst [vmem:[#allocation49_spill] sm:$0xff] %v2778_v36  ;;  %3565 = vst [vmem:[#allocation50_spill] sm:$0xff] %v2781_v54 }
 0x112   :  { %v232_v63 = vpop.f32.mrf.mxu0  ;;  %v345_v0 = vpop.f32.mrf.mxu1 }
 0x113   :  { %v2784_v27 = vadd.f32 %v232_v63, %v2749_v7  ;;  %v2786_v10 = vadd.f32 %v345_v0, %v108_v11 }
 0x114   :  { %v234_v6 = vpop.f32.mrf.mxu0  ;;  %v347_v9 = vpop.f32.mrf.mxu1 }
 0x115   :  { %3566 = vst [vmem:[#allocation51_spill] sm:$0xff] %v2784_v27  ;;  %3567 = vst [vmem:[#allocation52_spill] sm:$0xff] %v2786_v10  ;;  %v2788_v3 = vadd.f32 %v234_v6, %v104_v5  ;;  %v2791_v1 = vadd.f32 %v347_v9, %v2751_v4 }
 0x117   :  { %3568 = vst [vmem:[#allocation53_spill] sm:$0xff] %v2788_v3  ;;  %3569 = vst [vmem:[#allocation54_spill] sm:$0xff] %v2791_v1 }
 0x118   :  { %v238_v61 = vpop.f32.mrf.mxu0  ;;  %v351_v60 = vpop.f32.mrf.mxu1 }
 0x119   :  { %v2794_v36 = vadd.f32 %v238_v61, %v2749_v7  ;;  %v2796_v2 = vadd.f32 %v351_v60, %v108_v11 }
 0x11a   :  { %v240_v54 = vpop.f32.mrf.mxu0  ;;  %v353_v62 = vpop.f32.mrf.mxu1 }
 0x11b   :  { %3570 = vst [vmem:[#allocation55_spill] sm:$0xff] %v2794_v36  ;;  %3571 = vst [vmem:[#allocation56_spill] sm:$0xff] %v2796_v2  ;;  %v2798_v63 = vadd.f32 %v240_v54, %v104_v5  ;;  %v2801_v0 = vadd.f32 %v353_v62, %v2751_v4 }
 0x11d   :  { %3572 = vst [vmem:[#allocation57_spill] sm:$0xff] %v2798_v63  ;;  %3573 = vst [vmem:[#allocation58_spill] sm:$0xff] %v2801_v0 }
 0x11e   :  { %v244_v27 = vpop.f32.mrf.mxu0  ;;  %v357_v6 = vpop.f32.mrf.mxu1 }
 0x11f   :  { %v2804_v3 = vadd.f32 %v244_v27, %v2749_v7  ;;  %v2806_v9 = vadd.f32 %v357_v6, %v108_v11 }
 0x120   :  { %v246_v1 = vpop.f32.mrf.mxu0  ;;  %v359_v10 = vpop.f32.mrf.mxu1 }
 0x121   :  { %3574 = vst [vmem:[#allocation59_spill] sm:$0xff] %v2804_v3  ;;  %3575 = vst [vmem:[#allocation60_spill] sm:$0xff] %v2806_v9  ;;  %v2808_v61 = vadd.f32 %v246_v1, %v104_v5  ;;  %v2811_v60 = vadd.f32 %v359_v10, %v2751_v4  ;;  %v322_v1 = vadd.f32 %v2740_v45, %v108_v11 }
 0x122   :  { %v211_v10 = vadd.f32 %v2745_v59, %v104_v5 }
 0x123   :  { %3576 = vst [vmem:[#allocation61_spill] sm:$0xff] %v2808_v61  ;;  %3577 = vst [vmem:[#allocation62_spill] sm:$0xff] %v2811_v60 }
 0x124   :  { %v250_v36 = vpop.f32.mrf.mxu0  ;;  %v363_v54 = vpop.f32.mrf.mxu1 }
 0x125   :  { %v2814_v63 = vadd.f32 %v250_v36, %v2749_v7  ;;  %v2816_v62 = vadd.f32 %v363_v54, %v108_v11 }
 0x126   :  { %v252_v0 = vpop.f32.mrf.mxu0  ;;  %v365_v2 = vpop.f32.mrf.mxu1 }
 0x127   :  { %3578 = vst [vmem:[#allocation63_spill] sm:$0xff] %v2814_v63  ;;  %3579 = vst [vmem:[#allocation64_spill] sm:$0xff] %v2816_v62  ;;  %v2818_v27 = vadd.f32 %v252_v0, %v104_v5  ;;  %v2821_v6 = vadd.f32 %v365_v2, %v2751_v4  ;;  %v324_v0 = vadd.f32 %v2747_v8, %v2751_v4 }
 0x128   :  { %v209_v2 = vadd.f32 %v2738_v18, %v2749_v7 }
 0x129   :  { %3580 = vst [vmem:[#allocation65_spill] sm:$0xff] %v2818_v27  ;;  %3581 = vst [vmem:[#allocation66_spill] sm:$0xff] %v2821_v6 }
 0x12a   :  { %v534_v3 = vpop.f32.mrf.mxu0  ;;  %v605_v61 = vpop.f32.mrf.mxu1 }
 0x12b   :  { %v612_v60 = vadd.f32 %v605_v61, %v322_v1  ;;  %v610_v6 = vadd.f32 %v534_v3, %v209_v2  ;;  %v3589_v2 = vld [vmem:[#allocation25_spill] sm:$0xff] }
 0x12c   :  { %v536_v9 = vpop.f32.mrf.mxu0  ;;  %v607_v63 = vpop.f32.mrf.mxu1 }
 0x12d   :  { %v1991_v58 = vmul.f32 -1.442695, %v612_v60  ;;  %v611_v36 = vadd.f32 %v536_v9, %v211_v10  ;;  %v613_v27 = vadd.f32 %v607_v63, %v324_v0  ;;  %v3585_v10 = vld [vmem:[#allocation21_spill] sm:$0xff]  ;;  %v3588_v0 = vld [vmem:[#allocation24_spill] sm:$0xff] }
 0x12f   :  { %2078 = vpow2.f32 %v1991_v58  ;;  %v1990_v54 = vmul.f32 -1.442695, %v611_v36  ;;  %v1992_v11 = vmul.f32 -1.442695, %v613_v27  ;;  %v3583_v27 = vld [vmem:[#allocation19_spill] sm:$0xff]  ;;  %v3586_v36 = vld [vmem:[#allocation22_spill] sm:$0xff] }
 0x131   :  { %2080 = vpow2.f32 %v1990_v54  ;;  %v3587_v54 = vld [vmem:[#allocation23_spill] sm:$0xff] }
 0x132   :  { %2082 = vpow2.f32 %v1992_v11  ;;  %v3590_v11 = vld [vmem:[#allocation26_spill] sm:$0xff] }
 0x13c   :  { %v2079_v45 = vpop.eup %2078 }
 0x13d   :  { %v624_v62 = vadd.f32 1.0, %v2079_v45  ;;  %v3591_v45 = vld [vmem:[#allocation27_spill] sm:$0xff] }
 0x13e   :  { %v2081_v59 = vpop.eup %2080 }
 0x13f   :  { %2084 = vrcp.f32 %v624_v62  ;;  %v618_v5 = vadd.f32 1.0, %v2081_v59  ;;  %v2083_v58 = vpop.eup %2082  ;;  %v3582_v62 = vld [vmem:[#allocation18_spill] sm:$0xff]  ;;  %v3592_v59 = vld [vmem:[#allocation28_spill] sm:$0xff] }
 0x140   :  { %2086 = vtanh.f32 %v610_v6  ;;  %v630_v1 = vadd.f32 1.0, %v2083_v58  ;;  %v3584_v6 = vld [vmem:[#allocation20_spill] sm:$0xff]  ;;  %v3594_v58 = vld [vmem:[#allocation30_spill] sm:$0xff] }
 0x141   :  { %2088 = vrcp.f32 %v618_v5  ;;  %v3593_v5 = vld [vmem:[#allocation29_spill] sm:$0xff] }
 0x142   :  { %2090 = vrcp.f32 %v630_v1  ;;  %v3598_v1 = vld [vmem:[#allocation34_spill] sm:$0xff] }
 0x14c   :  { %v2085_v9 = vpop.eup %2084 }
 0x14d   :  { %v2087_v61 = vpop.eup %2086  ;;  %v634_v4 = vmul.f32 0.0, %v2085_v9  ;;  %v3595_v9 = vld [vmem:[#allocation31_spill] sm:$0xff] }
 0x14e   :  { %v2089_v60 = vpop.eup %2088 }
 0x14f   :  { %v633_v8 = vmul.f32 %v2089_v60, %v2087_v61  ;;  %v2091_v7 = vpop.eup %2090  ;;  %v3596_v61 = vld [vmem:[#allocation32_spill] sm:$0xff]  ;;  %v3597_v60 = vld [vmem:[#allocation33_spill] sm:$0xff] }
 0x151   :  { %v2829_v63 = vadd.f32 %v634_v4, %v633_v8  ;;  %v3599_v4 = vld [vmem:[#allocation35_spill] sm:$0xff]  ;;  %v3600_v8 = vld [vmem:[#allocation36_spill] sm:$0xff] }
 0x153   :  { %2092 = vtanh.f32 %v2829_v63 }
 0x160   :  { %v2093_v18 = vpop.eup %2092 }
 0x161   :  { %v637_v3 = vmul.f32 %v2093_v18, %v2091_v7  ;;  %v3601_v7 = vld [vmem:[#allocation37_spill] sm:$0xff]  ;;  %v3602_v18 = vmov 0.0  }
 0x163   :  { %708 = vmatmul.mubr.f32.vlgmr.msra.gmra.mxu0 %v637_v3  ;;  %779 = vmatmul.mubr.f32.vlgmr.msra.gmra.mxu1 %v637_v3  ;;  %v3603_v3 = vld [vmem:[#allocation38_spill] sm:$0xff] }
 0x164   :  { %819 = vmatpush1.msra.mxu0 %v2448_v12  ;;  %890 = vmatpush1.msra.mxu1 %v2450_v13 }
 0x165   :  { %820 = vmatprep.subr.mxu0 %v2454_v14  ;;  %891 = vmatprep.subr.mxu1 %v2456_v15 }
 0x166   :  { %821 = vmatpush1.msra.mxu0 %v2462_v16  ;;  %892 = vmatpush1.msra.mxu1 %v2464_v17 }
 0x167   :  { %822 = vmatprep.subr.mxu0 %v2470_v19  ;;  %893 = vmatprep.subr.mxu1 %v2472_v20 }
 0x168   :  { %823 = vmatpush1.msra.mxu0 %v2476_v21  ;;  %894 = vmatpush1.msra.mxu1 %v2478_v22 }
 0x169   :  { %824 = vmatprep.subr.mxu0 %v2482_v23  ;;  %895 = vmatprep.subr.mxu1 %v2484_v24 }
 0x16a   :  { %825 = vmatpush1.msra.mxu0 %v2490_v25  ;;  %896 = vmatpush1.msra.mxu1 %v2492_v26 }
 0x16b   :  { %826 = vmatprep.subr.mxu0 %v2498_v28  ;;  %897 = vmatprep.subr.mxu1 %v2500_v29 }
 0x16c   :  { %827 = vmatpush1.msra.mxu0 %v2504_v30  ;;  %898 = vmatpush1.msra.mxu1 %v2506_v31 }
 0x16d   :  { %828 = vmatprep.subr.mxu0 %v2510_v32  ;;  %899 = vmatprep.subr.mxu1 %v2512_v33 }
 0x16e   :  { %829 = vmatpush1.msra.mxu0 %v2518_v34  ;;  %900 = vmatpush1.msra.mxu1 %v2520_v35 }
 0x16f   :  { %830 = vmatprep.subr.mxu0 %v2526_v37  ;;  %901 = vmatprep.subr.mxu1 %v2528_v38 }
 0x170   :  { %831 = vmatpush1.msra.mxu0 %v2532_v39  ;;  %902 = vmatpush1.msra.mxu1 %v2534_v40 }
 0x171   :  { %832 = vmatprep.subr.mxu0 %v2538_v41  ;;  %903 = vmatprep.subr.mxu1 %v2540_v42 }
 0x172   :  { %833 = vmatpush1.msra.mxu0 %v2546_v43  ;;  %904 = vmatpush1.msra.mxu1 %v2548_v44 }
 0x173   :  { %834 = vmatprep.subr.mxu0 %v2554_v46  ;;  %905 = vmatprep.subr.mxu1 %v2556_v47 }
 0x174   :  { %835 = vmatpush1.msra.mxu0 %v2560_v48  ;;  %906 = vmatpush1.msra.mxu1 %v2562_v49 }
 0x175   :  { %836 = vmatprep.subr.mxu0 %v2566_v50  ;;  %907 = vmatprep.subr.mxu1 %v2568_v51 }
 0x176   :  { %837 = vmatpush1.msra.mxu0 %v2574_v52  ;;  %908 = vmatpush1.msra.mxu1 %v2576_v53 }
 0x177   :  { %838 = vmatprep.subr.mxu0 %v2582_v55  ;;  %909 = vmatprep.subr.mxu1 %v2584_v56 }
 0x178   :  { %839 = vmatpush1.msra.mxu0 %v2588_v57  ;;  %910 = vmatpush1.msra.mxu1 %v3582_v62 }
 0x179   :  { %840 = vmatprep.subr.mxu0 %v3583_v27  ;;  %911 = vmatprep.subr.mxu1 %v3584_v6 }
 0x17a   :  { %841 = vmatpush1.msra.mxu0 %v3585_v10  ;;  %912 = vmatpush1.msra.mxu1 %v3586_v36 }
 0x17b   :  { %842 = vmatprep.subr.mxu0 %v3587_v54  ;;  %913 = vmatprep.subr.mxu1 %v3588_v0  ;;  %v3609_v54 = vld [vmem:[#allocation39_spill] sm:$0xff] }
 0x17c   :  { %843 = vmatpush1.msra.mxu0 %v3589_v2  ;;  %914 = vmatpush1.msra.mxu1 %v3590_v11  ;;  %v3608_v2 = vld [vmem:[#allocation42_spill] sm:$0xff] }
 0x17d   :  { %844 = vmatprep.subr.mxu0 %v3591_v45  ;;  %915 = vmatprep.subr.mxu1 %v3592_v59  ;;  %v3607_v45 = vld [vmem:[#allocation41_spill] sm:$0xff] }
 0x17e   :  { %845 = vmatpush1.msra.mxu0 %v3593_v5  ;;  %916 = vmatpush1.msra.mxu1 %v3594_v58  ;;  %v3604_v58 = vld [vmem:[#allocation16_spill] sm:$0xff] }
 0x17f   :  { %846 = vmatprep.subr.mxu0 %v3595_v9  ;;  %917 = vmatprep.subr.mxu1 %v3596_v61  ;;  %v3605_v9 = vld [vmem:[#allocation17_spill] sm:$0xff]  ;;  %v3606_v5 = vld [vmem:[#allocation40_spill] sm:$0xff] }
 0x180   :  { %847 = vmatpush1.msra.mxu0 %v3597_v60  ;;  %918 = vmatpush1.msra.mxu1 %v3598_v1 }
 0x181   :  { %848 = vmatprep.subr.mxu0 %v3599_v4  ;;  %919 = vmatprep.subr.mxu1 %v3600_v8 }
 0x182   :  { %849 = vmatpush1.msra.mxu0 %v3601_v7  ;;  %882 = vmatprep.mubr.f32.mxu0 %v3602_v18 }
 0x183   :  { %920 = vmatpush1.msra.mxu1 %v3603_v3  ;;  %953 = vmatprep.mubr.f32.mxu1 %v3602_v18 }
 0x184   :  { %993 = vmatprep.subr.mxu0 %v3604_v58  ;;  %1064 = vmatprep.subr.mxu1 %v3605_v9 }
 0x223   :  { %v709_v61 = vpop.f32.mrf.mxu0  ;;  %v780_v60 = vpop.f32.mrf.mxu1 }
 0x224   :  { %v787_v1 = vadd.f32 %v780_v60, %v3606_v5  ;;  %v785_v58 = vadd.f32 %v709_v61, %v3609_v54  ;;  %v3632_v61 = vld [vmem:[#allocation45_spill] sm:$0xff] }
 0x225   :  { %v711_v59 = vpop.f32.mrf.mxu0  ;;  %v782_v11 = vpop.f32.mrf.mxu1 }
 0x226   :  { %v1994_v4 = vmul.f32 -1.442695, %v787_v1  ;;  %v786_v8 = vadd.f32 %v711_v59, %v3607_v45  ;;  %v788_v3 = vadd.f32 %v782_v11, %v3608_v2 }
 0x228   :  { %2094 = vpow2.f32 %v1994_v4  ;;  %v1993_v7 = vmul.f32 -1.442695, %v786_v8  ;;  %v1995_v0 = vmul.f32 -1.442695, %v788_v3 }
 0x22a   :  { %2096 = vpow2.f32 %v1993_v7 }
 0x22b   :  { %2098 = vpow2.f32 %v1995_v0 }
 0x235   :  { %v2095_v18 = vpop.eup %2094 }
 0x236   :  { %v799_v36 = vadd.f32 1.0, %v2095_v18 }
 0x237   :  { %v2097_v9 = vpop.eup %2096 }
 0x238   :  { %2100 = vrcp.f32 %v799_v36  ;;  %v793_v10 = vadd.f32 1.0, %v2097_v9  ;;  %v2099_v5 = vpop.eup %2098 }
 0x239   :  { %2102 = vtanh.f32 %v785_v58  ;;  %v805_v1 = vadd.f32 1.0, %v2099_v5  ;;  %v3633_v58 = vld [vmem:[#allocation46_spill] sm:$0xff] }
 0x23a   :  { %2104 = vrcp.f32 %v793_v10 }
 0x23b   :  { %2106 = vrcp.f32 %v805_v1 }
 0x245   :  { %v2101_v60 = vpop.eup %2100 }
 0x246   :  { %v2103_v45 = vpop.eup %2102  ;;  %v809_v4 = vmul.f32 %v2101_v60, %v2829_v63 }
 0x247   :  { %v2105_v59 = vpop.eup %2104 }
 0x248   :  { %v808_v8 = vmul.f32 %v2105_v59, %v2103_v45  ;;  %v2107_v54 = vpop.eup %2106  ;;  %v3634_v45 = vld [vmem:[#allocation43_spill] sm:$0xff] }
 0x24a   :  { %v2903_v2 = vadd.f32 %v809_v4, %v808_v8 }
 0x24c   :  { %2108 = vtanh.f32 %v2903_v2 }
 0x259   :  { %v2109_v11 = vpop.eup %2108 }
 0x25a   :  { %v812_v0 = vmul.f32 %v2109_v11, %v2107_v54 }
 0x25c   :  { %883 = vmatmul.mubr.f32.vlgmr.msra.gmra.mxu0 %v812_v0  ;;  %954 = vmatmul.mubr.f32.vlgmr.msra.gmra.mxu1 %v812_v0 }
 0x25d   :  { %994 = vmatpush1.msra.mxu0 %v2448_v12  ;;  %1065 = vmatpush1.msra.mxu1 %v2450_v13  ;;  %v3610_v12 = vld [vmem:[#allocation21_spill] sm:$0xff]  ;;  %v3611_v13 = vld [vmem:[#allocation22_spill] sm:$0xff] }
 0x25e   :  { %995 = vmatprep.subr.mxu0 %v2454_v14  ;;  %1066 = vmatprep.subr.mxu1 %v2456_v15  ;;  %v3612_v14 = vld [vmem:[#allocation23_spill] sm:$0xff]  ;;  %v3613_v15 = vld [vmem:[#allocation24_spill] sm:$0xff] }
 0x25f   :  { %996 = vmatpush1.msra.mxu0 %v2462_v16  ;;  %1067 = vmatpush1.msra.mxu1 %v2464_v17  ;;  %v3614_v16 = vld [vmem:[#allocation25_spill] sm:$0xff]  ;;  %v3615_v17 = vld [vmem:[#allocation26_spill] sm:$0xff] }
 0x260   :  { %997 = vmatprep.subr.mxu0 %v2470_v19  ;;  %1068 = vmatprep.subr.mxu1 %v2472_v20  ;;  %v3616_v19 = vld [vmem:[#allocation27_spill] sm:$0xff]  ;;  %v3617_v20 = vld [vmem:[#allocation28_spill] sm:$0xff] }
 0x261   :  { %998 = vmatpush1.msra.mxu0 %v2476_v21  ;;  %1069 = vmatpush1.msra.mxu1 %v2478_v22  ;;  %v3618_v21 = vld [vmem:[#allocation29_spill] sm:$0xff]  ;;  %v3619_v22 = vld [vmem:[#allocation30_spill] sm:$0xff] }
 0x262   :  { %999 = vmatprep.subr.mxu0 %v2482_v23  ;;  %1070 = vmatprep.subr.mxu1 %v2484_v24  ;;  %v3620_v23 = vld [vmem:[#allocation31_spill] sm:$0xff]  ;;  %v3621_v24 = vld [vmem:[#allocation32_spill] sm:$0xff] }
 0x263   :  { %1000 = vmatpush1.msra.mxu0 %v2490_v25  ;;  %1071 = vmatpush1.msra.mxu1 %v2492_v26  ;;  %v3622_v25 = vld [vmem:[#allocation33_spill] sm:$0xff]  ;;  %v3623_v26 = vld [vmem:[#allocation34_spill] sm:$0xff] }
 0x264   :  { %1001 = vmatprep.subr.mxu0 %v2498_v28  ;;  %1072 = vmatprep.subr.mxu1 %v2500_v29  ;;  %v3624_v28 = vld [vmem:[#allocation35_spill] sm:$0xff]  ;;  %v3625_v29 = vld [vmem:[#allocation36_spill] sm:$0xff] }
 0x265   :  { %1002 = vmatpush1.msra.mxu0 %v2504_v30  ;;  %1073 = vmatpush1.msra.mxu1 %v2506_v31  ;;  %v3626_v30 = vld [vmem:[#allocation37_spill] sm:$0xff]  ;;  %v3627_v31 = vmov 0.0  }
 0x266   :  { %1003 = vmatprep.subr.mxu0 %v2510_v32  ;;  %1074 = vmatprep.subr.mxu1 %v2512_v33  ;;  %v3628_v32 = vld [vmem:[#allocation38_spill] sm:$0xff]  ;;  %v2970_v33 = vld [vmem:[#allocation8 + $0x1e8] sm:$0xff] }
 0x267   :  { %1004 = vmatpush1.msra.mxu0 %v2518_v34  ;;  %1075 = vmatpush1.msra.mxu1 %v2520_v35  ;;  %3629 = vst [vmem:[#allocation18_spill] sm:$0xff] %v2970_v33  ;;  %v2973_v34 = vld [vmem:[#allocation8 + $0x1f8] sm:$0xff] }
 0x268   :  { %1005 = vmatprep.subr.mxu0 %v2526_v37  ;;  %1076 = vmatprep.subr.mxu1 %v2528_v38  ;;  %3630 = vst [vmem:[#allocation19_spill] sm:$0xff] %v2973_v34  ;;  %v3631_v38 = vld [vmem:[#allocation44_spill] sm:$0xff] }
 0x269   :  { %1006 = vmatpush1.msra.mxu0 %v2532_v39  ;;  %1077 = vmatpush1.msra.mxu1 %v2534_v40 }
 0x26a   :  { %1007 = vmatprep.subr.mxu0 %v2538_v41  ;;  %1078 = vmatprep.subr.mxu1 %v2540_v42 }
 0x26b   :  { %1008 = vmatpush1.msra.mxu0 %v2546_v43  ;;  %1079 = vmatpush1.msra.mxu1 %v2548_v44 }
 0x26c   :  { %1009 = vmatprep.subr.mxu0 %v2554_v46  ;;  %1080 = vmatprep.subr.mxu1 %v2556_v47 }
 0x26d   :  { %1010 = vmatpush1.msra.mxu0 %v2560_v48  ;;  %1081 = vmatpush1.msra.mxu1 %v2562_v49 }
 0x26e   :  { %1011 = vmatprep.subr.mxu0 %v2566_v50  ;;  %1082 = vmatprep.subr.mxu1 %v2568_v51 }
 0x26f   :  { %1012 = vmatpush1.msra.mxu0 %v2574_v52  ;;  %1083 = vmatpush1.msra.mxu1 %v2576_v53 }
 0x270   :  { %1013 = vmatprep.subr.mxu0 %v2582_v55  ;;  %1084 = vmatprep.subr.mxu1 %v2584_v56 }
 0x271   :  { %1014 = vmatpush1.msra.mxu0 %v2588_v57  ;;  %1085 = vmatpush1.msra.mxu1 %v3582_v62 }
 0x272   :  { %1015 = vmatprep.subr.mxu0 %v3583_v27  ;;  %1086 = vmatprep.subr.mxu1 %v3584_v6 }
 0x273   :  { %1016 = vmatpush1.msra.mxu0 %v3610_v12  ;;  %1087 = vmatpush1.msra.mxu1 %v3611_v13 }
 0x274   :  { %1017 = vmatprep.subr.mxu0 %v3612_v14  ;;  %1088 = vmatprep.subr.mxu1 %v3613_v15 }
 0x275   :  { %1018 = vmatpush1.msra.mxu0 %v3614_v16  ;;  %1089 = vmatpush1.msra.mxu1 %v3615_v17 }
 0x276   :  { %1019 = vmatprep.subr.mxu0 %v3616_v19  ;;  %1090 = vmatprep.subr.mxu1 %v3617_v20 }
 0x277   :  { %1020 = vmatpush1.msra.mxu0 %v3618_v21  ;;  %1091 = vmatpush1.msra.mxu1 %v3619_v22 }
 0x278   :  { %1021 = vmatprep.subr.mxu0 %v3620_v23  ;;  %1092 = vmatprep.subr.mxu1 %v3621_v24 }
 0x279   :  { %1022 = vmatpush1.msra.mxu0 %v3622_v25  ;;  %1093 = vmatpush1.msra.mxu1 %v3623_v26 }
 0x27a   :  { %1023 = vmatprep.subr.mxu0 %v3624_v28  ;;  %1094 = vmatprep.subr.mxu1 %v3625_v29 }
 0x27b   :  { %1024 = vmatpush1.msra.mxu0 %v3626_v30  ;;  %1057 = vmatprep.mubr.f32.mxu0 %v3627_v31 }
 0x27c   :  { %1095 = vmatpush1.msra.mxu1 %v3628_v32  ;;  %1128 = vmatprep.mubr.f32.mxu1 %v3627_v31 }
 0x27d   :  { %1168 = vmatprep.subr.mxu0 %v2970_v33  ;;  %1239 = vmatprep.subr.mxu1 %v2973_v34 }
 0x31c   :  { %v884_v35 = vpop.f32.mrf.mxu0  ;;  %v955_v37 = vpop.f32.mrf.mxu1 }
 0x31d   :  { %v962_v63 = vadd.f32 %v955_v37, %v3631_v38  ;;  %v960_v59 = vadd.f32 %v884_v35, %v3634_v45  ;;  %v3005_v45 = vld [vmem:[#allocation8 + $0x1b8] sm:$0xff] }
 0x31e   :  { %v886_v10 = vpop.f32.mrf.mxu0  ;;  %v957_v3 = vpop.f32.mrf.mxu1 }
 0x31f   :  { %v1997_v36 = vmul.f32 -1.442695, %v962_v63  ;;  %v961_v7 = vadd.f32 %v886_v10, %v3632_v61  ;;  %v963_v9 = vadd.f32 %v957_v3, %v3633_v58  ;;  %v2987_v3 = vld [vmem:[#allocation8 + $0x1f0] sm:$0xff]  ;;  %v2993_v58 = vld [vmem:[#allocation8 + $0x1d8] sm:$0xff] }
 0x321   :  { %2110 = vpow2.f32 %v1997_v36  ;;  %v1996_v18 = vmul.f32 -1.442695, %v961_v7  ;;  %v1998_v5 = vmul.f32 -1.442695, %v963_v9  ;;  %v2996_v9 = vld [vmem:[#allocation8 + $0x1c0] sm:$0xff] }
 0x323   :  { %2112 = vpow2.f32 %v1996_v18  ;;  %v2984_v18 = vld [vmem:[#allocation8 + $0x1e0] sm:$0xff] }
 0x324   :  { %2114 = vpow2.f32 %v1998_v5  ;;  %v2999_v5 = vld [vmem:[#allocation8 + $0x1d0] sm:$0xff] }
 0x32e   :  { %v2111_v60 = vpop.eup %2110 }
 0x32f   :  { %v974_v1 = vadd.f32 1.0, %v2111_v60  ;;  %v3002_v60 = vld [vmem:[#allocation8 + $0x1a8] sm:$0xff] }
 0x330   :  { %v2113_v4 = vpop.eup %2112 }
 0x331   :  { %2116 = vrcp.f32 %v974_v1  ;;  %v968_v8 = vadd.f32 1.0, %v2113_v4  ;;  %v2115_v54 = vpop.eup %2114  ;;  %v3011_v1 = vld [vmem:[#allocation8 + $0x1b0] sm:$0xff]  ;;  %v3014_v4 = vld [vmem:[#allocation8 + $0x188] sm:$0xff] }
 0x332   :  { %2118 = vtanh.f32 %v960_v59  ;;  %v980_v38 = vadd.f32 1.0, %v2115_v54  ;;  %v3008_v59 = vld [vmem:[#allocation8 + $0x1a0] sm:$0xff] }
 0x333   :  { %2120 = vrcp.f32 %v968_v8  ;;  %v3017_v8 = vld [vmem:[#allocation8 + $0x198] sm:$0xff]  ;;  %v3020_v54 = vld [vmem:[#allocation8 + $0x180] sm:$0xff] }
 0x334   :  { %2122 = vrcp.f32 %v980_v38  ;;  %v3032_v38 = vld [vmem:[#allocation8 + $0x160] sm:$0xff] }
 0x335   :  { %3635 = vst [vmem:[#allocation20_spill] sm:$0xff] %v3032_v38 }
 0x33e   :  { %v2117_v11 = vpop.eup %2116 }
 0x33f   :  { %v2119_v0 = vpop.eup %2118  ;;  %v984_v63 = vmul.f32 %v2117_v11, %v2903_v2  ;;  %v2990_v2 = vld [vmem:[#allocation8 + $0x1c8] sm:$0xff]  ;;  %v3023_v11 = vld [vmem:[#allocation8 + $0x190] sm:$0xff] }
 0x340   :  { %v2121_v37 = vpop.eup %2120 }
 0x341   :  { %v983_v10 = vmul.f32 %v2121_v37, %v2119_v0  ;;  %v2123_v35 = vpop.eup %2122  ;;  %v3026_v0 = vld [vmem:[#allocation8 + $0x168] sm:$0xff]  ;;  %v3029_v37 = vld [vmem:[#allocation8 + $0x178] sm:$0xff] }
 0x343   :  { %v2981_v36 = vadd.f32 %v984_v63, %v983_v10  ;;  %v3035_v63 = vld [vmem:[#allocation8 + $0x170] sm:$0xff]  ;;  %v3038_v10 = vld [vmem:[#allocation8 + $0x148] sm:$0xff] }
 0x344   :  { %3636 = vst [vmem:[#allocation16_spill] sm:$0xff] %v3035_v63 }
 0x345   :  { %2124 = vtanh.f32 %v2981_v36 }
 0x352   :  { %v2125_v61 = vpop.eup %2124 }
 0x353   :  { %v987_v7 = vmul.f32 %v2125_v61, %v2123_v35  ;;  %v3041_v35 = vld [vmem:[#allocation8 + $0x158] sm:$0xff]  ;;  %v3044_v61 = vld [vmem:[#allocation8 + $0x140] sm:$0xff] }
 0x355   :  { %1058 = vmatmul.mubr.f32.vlgmr.msra.gmra.mxu0 %v987_v7  ;;  %1129 = vmatmul.mubr.f32.vlgmr.msra.gmra.mxu1 %v987_v7  ;;  %v3047_v7 = vld [vmem:[#allocation8 + $0x150] sm:$0xff] }
 0x356   :  { %1169 = vmatpush1.msra.mxu0 %v2984_v18  ;;  %1240 = vmatpush1.msra.mxu1 %v2987_v3 }
 0x357   :  { %1170 = vmatprep.subr.mxu0 %v2990_v2  ;;  %1241 = vmatprep.subr.mxu1 %v2993_v58 }
 0x358   :  { %1171 = vmatpush1.msra.mxu0 %v2996_v9  ;;  %1242 = vmatpush1.msra.mxu1 %v2999_v5 }
 0x359   :  { %1172 = vmatprep.subr.mxu0 %v3002_v60  ;;  %1243 = vmatprep.subr.mxu1 %v3005_v45 }
 0x35a   :  { %1173 = vmatpush1.msra.mxu0 %v3008_v59  ;;  %1244 = vmatpush1.msra.mxu1 %v3011_v1 }
 0x35b   :  { %1174 = vmatprep.subr.mxu0 %v3014_v4  ;;  %1245 = vmatprep.subr.mxu1 %v3017_v8 }
 0x35c   :  { %1175 = vmatpush1.msra.mxu0 %v3020_v54  ;;  %1246 = vmatpush1.msra.mxu1 %v3023_v11 }
 0x35d   :  { %1176 = vmatprep.subr.mxu0 %v3026_v0  ;;  %1247 = vmatprep.subr.mxu1 %v3029_v37 }
 0x35e   :  { %1177 = vmatpush1.msra.mxu0 %v3032_v38  ;;  %1248 = vmatpush1.msra.mxu1 %v3035_v63  ;;  %v3050_v38 = vld [vmem:[#allocation8 + $0x128] sm:$0xff]  ;;  %v3053_v63 = vld [vmem:[#allocation8 + $0x138] sm:$0xff] }
 0x35f   :  { %1178 = vmatprep.subr.mxu0 %v3038_v10  ;;  %1249 = vmatprep.subr.mxu1 %v3041_v35 }
 0x360   :  { %1179 = vmatpush1.msra.mxu0 %v3044_v61  ;;  %1250 = vmatpush1.msra.mxu1 %v3047_v7 }
 0x361   :  { %1180 = vmatprep.subr.mxu0 %v3050_v38  ;;  %1251 = vmatprep.subr.mxu1 %v3053_v63 }
 0x362   :  { %1181 = vmatpush1.msra.mxu0 %v2532_v39  ;;  %1252 = vmatpush1.msra.mxu1 %v2534_v40 }
 0x363   :  { %1182 = vmatprep.subr.mxu0 %v2538_v41  ;;  %1253 = vmatprep.subr.mxu1 %v2540_v42  ;;  %v3637_v41 = vld [vmem:[#allocation48_spill] sm:$0xff] }
 0x364   :  { %1183 = vmatpush1.msra.mxu0 %v2546_v43  ;;  %1254 = vmatpush1.msra.mxu1 %v2548_v44 }
 0x365   :  { %1184 = vmatprep.subr.mxu0 %v2554_v46  ;;  %1255 = vmatprep.subr.mxu1 %v2556_v47  ;;  %v3638_v46 = vld [vmem:[#allocation49_spill] sm:$0xff] }
 0x366   :  { %1185 = vmatpush1.msra.mxu0 %v2560_v48  ;;  %1256 = vmatpush1.msra.mxu1 %v2562_v49 }
 0x367   :  { %1186 = vmatprep.subr.mxu0 %v2566_v50  ;;  %1257 = vmatprep.subr.mxu1 %v2568_v51  ;;  %v3639_v50 = vld [vmem:[#allocation50_spill] sm:$0xff] }
 0x368   :  { %1187 = vmatpush1.msra.mxu0 %v2574_v52  ;;  %1258 = vmatpush1.msra.mxu1 %v2576_v53 }
 0x369   :  { %1188 = vmatprep.subr.mxu0 %v2582_v55  ;;  %1259 = vmatprep.subr.mxu1 %v2584_v56  ;;  %v3640_v55 = vld [vmem:[#allocation47_spill] sm:$0xff] }
 0x36a   :  { %1189 = vmatpush1.msra.mxu0 %v2588_v57  ;;  %1260 = vmatpush1.msra.mxu1 %v3582_v62 }
 0x36b   :  { %1190 = vmatprep.subr.mxu0 %v3583_v27  ;;  %1261 = vmatprep.subr.mxu1 %v3584_v6 }
 0x36c   :  { %1191 = vmatpush1.msra.mxu0 %v3610_v12  ;;  %1262 = vmatpush1.msra.mxu1 %v3611_v13 }
 0x36d   :  { %1192 = vmatprep.subr.mxu0 %v3612_v14  ;;  %1263 = vmatprep.subr.mxu1 %v3613_v15 }
 0x36e   :  { %1193 = vmatpush1.msra.mxu0 %v3614_v16  ;;  %1264 = vmatpush1.msra.mxu1 %v3615_v17 }
 0x36f   :  { %1194 = vmatprep.subr.mxu0 %v3616_v19  ;;  %1265 = vmatprep.subr.mxu1 %v3617_v20 }
 0x370   :  { %1195 = vmatpush1.msra.mxu0 %v3618_v21  ;;  %1266 = vmatpush1.msra.mxu1 %v3619_v22 }
 0x371   :  { %1196 = vmatprep.subr.mxu0 %v3620_v23  ;;  %1267 = vmatprep.subr.mxu1 %v3621_v24  ;;  %v3641_v23 = vld [vmem:[#allocation20_spill] sm:$0xff] }
 0x372   :  { %1197 = vmatpush1.msra.mxu0 %v3622_v25  ;;  %1268 = vmatpush1.msra.mxu1 %v3623_v26  ;;  %v3642_v24 = vld [vmem:[#allocation16_spill] sm:$0xff]  ;;  %v3130_v25 = vld [vmem:[#allocation8 + $0x120] sm:$0xff]  ;;  %v3133_v26 = vld [vmem:[#allocation8 + $0x130] sm:$0xff] }
 0x373   :  { %1198 = vmatprep.subr.mxu0 %v3624_v28  ;;  %1269 = vmatprep.subr.mxu1 %v3625_v29  ;;  %v3136_v28 = vld [vmem:[#allocation8 + $0x108] sm:$0xff]  ;;  %v3139_v29 = vld [vmem:[#allocation8 + $0x118] sm:$0xff] }
 0x374   :  { %1199 = vmatpush1.msra.mxu0 %v3626_v30  ;;  %1232 = vmatprep.mubr.f32.mxu0 %v3627_v31  ;;  %v3142_v30 = vld [vmem:[#allocation8 + $0x100] sm:$0xff] }
 0x375   :  { %1270 = vmatpush1.msra.mxu1 %v3628_v32  ;;  %1303 = vmatprep.mubr.f32.mxu1 %v3627_v31  ;;  %v3145_v32 = vld [vmem:[#allocation8 + $0x110] sm:$0xff] }
 0x376   :  { %1343 = vmatprep.subr.mxu0 %v2970_v33  ;;  %1414 = vmatprep.subr.mxu1 %v2973_v34 }
 0x415   :  { %v1059_v39 = vpop.f32.mrf.mxu0  ;;  %v1130_v40 = vpop.f32.mrf.mxu1 }
 0x416   :  { %v1137_v42 = vadd.f32 %v1130_v40, %v3637_v41  ;;  %v1135_v56 = vadd.f32 %v1059_v39, %v3640_v55  ;;  %v3151_v39 = vld [vmem:[#allocation8 + $0xf8] sm:$0xff]  ;;  %v3154_v40 = vld [vmem:[#allocation8 + $0xe0] sm:$0xff]  ;;  %v3157_v41 = vld [vmem:[#allocation8 + $0xf0] sm:$0xff] }
 0x417   :  { %v1061_v43 = vpop.f32.mrf.mxu0  ;;  %v1132_v49 = vpop.f32.mrf.mxu1  ;;  %v3193_v55 = vld [vmem:[#allocation8 + $0x90] sm:$0xff] }
 0x418   :  { %v2000_v44 = vmul.f32 -1.442695, %v1137_v42  ;;  %v1136_v47 = vadd.f32 %v1061_v43, %v3638_v46  ;;  %v1138_v51 = vadd.f32 %v1132_v49, %v3639_v50  ;;  %v3160_v42 = vld [vmem:[#allocation8 + $0xc8] sm:$0xff]  ;;  %v3163_v43 = vld [vmem:[#allocation8 + $0xd8] sm:$0xff]  ;;  %v3169_v46 = vld [vmem:[#allocation8 + $0xd0] sm:$0xff]  ;;  %3644 = vst [vmem:[#allocation40_spill] sm:$0xff] %v3193_v55 }
 0x419   :  { %v3178_v49 = vld [vmem:[#allocation8 + $0xa0] sm:$0xff]  ;;  %v3181_v50 = vld [vmem:[#allocation8 + $0xb0] sm:$0xff] }
 0x41a   :  { %2126 = vpow2.f32 %v2000_v44  ;;  %v1999_v48 = vmul.f32 -1.442695, %v1136_v47  ;;  %v2001_v52 = vmul.f32 -1.442695, %v1138_v51  ;;  %v3166_v44 = vld [vmem:[#allocation8 + $0xc0] sm:$0xff]  ;;  %v3172_v47 = vld [vmem:[#allocation8 + $0xa8] sm:$0xff] }
 0x41b   :  { %v3184_v51 = vld [vmem:[#allocation8 + $0x88] sm:$0xff] }
 0x41c   :  { %2128 = vpow2.f32 %v1999_v48  ;;  %v3175_v48 = vld [vmem:[#allocation8 + $0xb8] sm:$0xff] }
 0x41d   :  { %2130 = vpow2.f32 %v2001_v52  ;;  %v3187_v52 = vld [vmem:[#allocation8 + $0x98] sm:$0xff] }
 0x427   :  { %v2127_v53 = vpop.eup %2126 }
 0x428   :  { %v1149_v57 = vadd.f32 1.0, %v2127_v53  ;;  %v3190_v53 = vld [vmem:[#allocation8 + $0x80] sm:$0xff] }
 0x429   :  { %v2129_v62 = vpop.eup %2128  ;;  %3643 = vst [vmem:[#allocation17_spill] sm:$0xff] %v3190_v53 }
 0x42a   :  { %2132 = vrcp.f32 %v1149_v57  ;;  %v1143_v27 = vadd.f32 1.0, %v2129_v62  ;;  %v2131_v6 = vpop.eup %2130  ;;  %v3199_v57 = vld [vmem:[#allocation8 + $0x78] sm:$0xff]  ;;  %v3202_v62 = vld [vmem:[#allocation8 + $0x60] sm:$0xff] }
 0x42b   :  { %2134 = vtanh.f32 %v1135_v56  ;;  %v1155_v15 = vadd.f32 1.0, %v2131_v6  ;;  %v3196_v56 = vld [vmem:[#allocation8 + $0x68] sm:$0xff]  ;;  %3646 = vst [vmem:[#allocation42_spill] sm:$0xff] %v3199_v57  ;;  %3647 = vst [vmem:[#allocation39_spill] sm:$0xff] %v3202_v62 }
 0x42c   :  { %2136 = vrcp.f32 %v1143_v27  ;;  %3645 = vst [vmem:[#allocation41_spill] sm:$0xff] %v3196_v56  ;;  %v3205_v27 = vld [vmem:[#allocation8 + $0x70] sm:$0xff]  ;;  %v3208_v6 = vld [vmem:[#allocation8 + $0x48] sm:$0xff] }
 0x42d   :  { %2138 = vrcp.f32 %v1155_v15  ;;  %3648 = vst [vmem:[#allocation21_spill] sm:$0xff] %v3205_v27  ;;  %3649 = vst [vmem:[#allocation22_spill] sm:$0xff] %v3208_v6  ;;  %v3220_v15 = vld [vmem:[#allocation8 + $0x28] sm:$0xff] }
 0x42e   :  { %3653 = vst [vmem:[#allocation26_spill] sm:$0xff] %v3220_v15 }
 0x437   :  { %v2133_v12 = vpop.eup %2132 }
 0x438   :  { %v2135_v13 = vpop.eup %2134  ;;  %v1159_v16 = vmul.f32 %v2133_v12, %v2981_v36  ;;  %v3148_v36 = vld [vmem:[#allocation8 + $0xe8] sm:$0xff]  ;;  %v3211_v12 = vld [vmem:[#allocation8 + $0x58] sm:$0xff] }
 0x439   :  { %v2137_v14 = vpop.eup %2136  ;;  %3650 = vst [vmem:[#allocation23_spill] sm:$0xff] %v3211_v12 }
 0x43a   :  { %v1158_v17 = vmul.f32 %v2137_v14, %v2135_v13  ;;  %v2139_v20 = vpop.eup %2138  ;;  %v3214_v13 = vld [vmem:[#allocation8 + $0x40] sm:$0xff]  ;;  %v3217_v14 = vld [vmem:[#allocation8 + $0x50] sm:$0xff] }
 0x43b   :  { %3651 = vst [vmem:[#allocation24_spill] sm:$0xff] %v3214_v13  ;;  %3652 = vst [vmem:[#allocation25_spill] sm:$0xff] %v3217_v14 }
 0x43c   :  { %v3103_v19 = vadd.f32 %v1159_v16, %v1158_v17  ;;  %v3223_v16 = vld [vmem:[#allocation8 + $0x38] sm:$0xff]  ;;  %v3226_v17 = vld [vmem:[#allocation8 + $0x20] sm:$0xff] }
 0x43d   :  { %3654 = vst [vmem:[#allocation27_spill] sm:$0xff] %v3223_v16  ;;  %3655 = vst [vmem:[#allocation28_spill] sm:$0xff] %v3226_v17 }
 0x43e   :  { %2140 = vtanh.f32 %v3103_v19 }
 0x44b   :  { %v2141_v21 = vpop.eup %2140 }
 0x44c   :  { %v1162_v22 = vmul.f32 %v2141_v21, %v2139_v20  ;;  %v3229_v20 = vld [vmem:[#allocation8 + $0x30] sm:$0xff]  ;;  %v3232_v21 = vld [vmem:[#allocation8 + $0x8] sm:$0xff] }
 0x44d   :  { %3656 = vst [vmem:[#allocation29_spill] sm:$0xff] %v3229_v20  ;;  %3657 = vst [vmem:[#allocation30_spill] sm:$0xff] %v3232_v21 }
 0x44e   :  { %1233 = vmatmul.mubr.f32.vlgmr.msra.gmra.mxu0 %v1162_v22  ;;  %1304 = vmatmul.mubr.f32.vlgmr.msra.gmra.mxu1 %v1162_v22  ;;  %v3235_v22 = vld [vmem:[#allocation8 + $0x18] sm:$0xff] }
 0x44f   :  { %1344 = vmatpush1.msra.mxu0 %v2984_v18  ;;  %1415 = vmatpush1.msra.mxu1 %v2987_v3  ;;  %3658 = vst [vmem:[#allocation31_spill] sm:$0xff] %v3235_v22 }
 0x450   :  { %1345 = vmatprep.subr.mxu0 %v2990_v2  ;;  %1416 = vmatprep.subr.mxu1 %v2993_v58 }
 0x451   :  { %1346 = vmatpush1.msra.mxu0 %v2996_v9  ;;  %1417 = vmatpush1.msra.mxu1 %v2999_v5 }
 0x452   :  { %1347 = vmatprep.subr.mxu0 %v3002_v60  ;;  %1418 = vmatprep.subr.mxu1 %v3005_v45 }
 0x453   :  { %1348 = vmatpush1.msra.mxu0 %v3008_v59  ;;  %1419 = vmatpush1.msra.mxu1 %v3011_v1 }
 0x454   :  { %1349 = vmatprep.subr.mxu0 %v3014_v4  ;;  %1420 = vmatprep.subr.mxu1 %v3017_v8 }
 0x455   :  { %1350 = vmatpush1.msra.mxu0 %v3020_v54  ;;  %1421 = vmatpush1.msra.mxu1 %v3023_v11 }
 0x456   :  { %1351 = vmatprep.subr.mxu0 %v3026_v0  ;;  %1422 = vmatprep.subr.mxu1 %v3029_v37 }
 0x457   :  { %1352 = vmatpush1.msra.mxu0 %v3641_v23  ;;  %1423 = vmatpush1.msra.mxu1 %v3642_v24 }
 0x458   :  { %1353 = vmatprep.subr.mxu0 %v3038_v10  ;;  %1424 = vmatprep.subr.mxu1 %v3041_v35 }
 0x459   :  { %1354 = vmatpush1.msra.mxu0 %v3044_v61  ;;  %1425 = vmatpush1.msra.mxu1 %v3047_v7 }
 0x45a   :  { %1355 = vmatprep.subr.mxu0 %v3050_v38  ;;  %1426 = vmatprep.subr.mxu1 %v3053_v63 }
 0x45b   :  { %1356 = vmatpush1.msra.mxu0 %v3130_v25  ;;  %1427 = vmatpush1.msra.mxu1 %v3133_v26 }
 0x45c   :  { %1357 = vmatprep.subr.mxu0 %v3136_v28  ;;  %1428 = vmatprep.subr.mxu1 %v3139_v29 }
 0x45d   :  { %1358 = vmatpush1.msra.mxu0 %v3142_v30  ;;  %1429 = vmatpush1.msra.mxu1 %v3145_v32 }
 0x45e   :  { %1359 = vmatprep.subr.mxu0 %v3148_v36  ;;  %1430 = vmatprep.subr.mxu1 %v3151_v39 }
 0x45f   :  { %1360 = vmatpush1.msra.mxu0 %v3154_v40  ;;  %1431 = vmatpush1.msra.mxu1 %v3157_v41 }
 0x460   :  { %1361 = vmatprep.subr.mxu0 %v3160_v42  ;;  %1432 = vmatprep.subr.mxu1 %v3163_v43 }
 0x461   :  { %1362 = vmatpush1.msra.mxu0 %v3166_v44  ;;  %1433 = vmatpush1.msra.mxu1 %v3169_v46 }
 0x462   :  { %1363 = vmatprep.subr.mxu0 %v3172_v47  ;;  %1434 = vmatprep.subr.mxu1 %v3175_v48 }
 0x463   :  { %1364 = vmatpush1.msra.mxu0 %v3178_v49  ;;  %1435 = vmatpush1.msra.mxu1 %v3181_v50 }
 0x464   :  { %1365 = vmatprep.subr.mxu0 %v3184_v51  ;;  %1436 = vmatprep.subr.mxu1 %v3187_v52 }
 0x465   :  { %1366 = vmatpush1.msra.mxu0 %v3190_v53  ;;  %1437 = vmatpush1.msra.mxu1 %v3193_v55 }
 0x466   :  { %1367 = vmatprep.subr.mxu0 %v3196_v56  ;;  %1438 = vmatprep.subr.mxu1 %v3199_v57  ;;  %v3664_v56 = vld [vmem:[#allocation51_spill] sm:$0xff] }
 0x467   :  { %1368 = vmatpush1.msra.mxu0 %v3202_v62  ;;  %1439 = vmatpush1.msra.mxu1 %v3205_v27  ;;  %v3663_v62 = vld [vmem:[#allocation54_spill] sm:$0xff] }
 0x468   :  { %1369 = vmatprep.subr.mxu0 %v3208_v6  ;;  %1440 = vmatprep.subr.mxu1 %v3211_v12  ;;  %v3662_v12 = vld [vmem:[#allocation53_spill] sm:$0xff] }
 0x469   :  { %1370 = vmatpush1.msra.mxu0 %v3214_v13  ;;  %1441 = vmatpush1.msra.mxu1 %v3217_v14 }
 0x46a   :  { %1371 = vmatprep.subr.mxu0 %v3220_v15  ;;  %1442 = vmatprep.subr.mxu1 %v3223_v16  ;;  %v3238_v15 = vld [vmem:[#allocation8] sm:$0xff]  ;;  %v3242_v16 = vld [vmem:[#allocation8 + $0x10] sm:$0xff] }
 0x46b   :  { %1372 = vmatpush1.msra.mxu0 %v3226_v17  ;;  %1443 = vmatpush1.msra.mxu1 %v3229_v20  ;;  %3659 = vst [vmem:[#allocation32_spill] sm:$0xff] %v3238_v15  ;;  %3660 = vst [vmem:[#allocation33_spill] sm:$0xff] %v3242_v16  ;;  %v3661_v17 = vld [vmem:[#allocation52_spill] sm:$0xff] }
 0x46c   :  { %1373 = vmatprep.subr.mxu0 %v3232_v21  ;;  %1444 = vmatprep.subr.mxu1 %v3235_v22 }
 0x46d   :  { %1374 = vmatpush1.msra.mxu0 %v3238_v15  ;;  %1407 = vmatprep.mubr.f32.mxu0 %v3627_v31 }
 0x46e   :  { %1445 = vmatpush1.msra.mxu1 %v3242_v16  ;;  %1478 = vmatprep.mubr.f32.mxu1 %v3627_v31 }
 0x46f   :  { %1518 = vmatprep.subr.mxu0 %v2970_v33  ;;  %1589 = vmatprep.subr.mxu1 %v2973_v34 }
 0x50e   :  { %v1234_v21 = vpop.f32.mrf.mxu0  ;;  %v1305_v20 = vpop.f32.mrf.mxu1 }
 0x50f   :  { %v1312_v22 = vadd.f32 %v1305_v20, %v3661_v17  ;;  %v1310_v33 = vadd.f32 %v1234_v21, %v3664_v56  ;;  %v3672_v21 = vld [vmem:[#allocation23_spill] sm:$0xff] }
 0x510   :  { %v1236_v14 = vpop.f32.mrf.mxu0  ;;  %v1307_v27 = vpop.f32.mrf.mxu1 }
 0x511   :  { %v2003_v13 = vmul.f32 -1.442695, %v1312_v22  ;;  %v1311_v15 = vadd.f32 %v1236_v14, %v3662_v12  ;;  %v1313_v16 = vadd.f32 %v1307_v27, %v3663_v62  ;;  %v3670_v27 = vld [vmem:[#allocation21_spill] sm:$0xff]  ;;  %v3673_v22 = vld [vmem:[#allocation24_spill] sm:$0xff] }
 0x513   :  { %2142 = vpow2.f32 %v2003_v13  ;;  %v2002_v6 = vmul.f32 -1.442695, %v1311_v15  ;;  %v2004_v57 = vmul.f32 -1.442695, %v1313_v16  ;;  %v3671_v16 = vld [vmem:[#allocation22_spill] sm:$0xff] }
 0x515   :  { %2144 = vpow2.f32 %v2002_v6 }
 0x516   :  { %2146 = vpow2.f32 %v2004_v57 }
 0x520   :  { %v2143_v31 = vpop.eup %2142 }
 0x521   :  { %v1324_v55 = vadd.f32 1.0, %v2143_v31 }
 0x522   :  { %v2145_v34 = vpop.eup %2144 }
 0x523   :  { %2148 = vrcp.f32 %v1324_v55  ;;  %v1318_v53 = vadd.f32 1.0, %v2145_v34  ;;  %v2147_v17 = vpop.eup %2146  ;;  %v3666_v34 = vld [vmem:[#allocation40_spill] sm:$0xff]  ;;  %v3669_v55 = vld [vmem:[#allocation39_spill] sm:$0xff] }
 0x524   :  { %2150 = vtanh.f32 %v1310_v33  ;;  %v1330_v14 = vadd.f32 1.0, %v2147_v17  ;;  %v3665_v33 = vld [vmem:[#allocation17_spill] sm:$0xff] }
 0x525   :  { %2152 = vrcp.f32 %v1318_v53  ;;  %v3668_v53 = vld [vmem:[#allocation42_spill] sm:$0xff]  ;;  %v3674_v17 = vld [vmem:[#allocation25_spill] sm:$0xff] }
 0x526   :  { %2154 = vrcp.f32 %v1330_v14  ;;  %v3678_v14 = vld [vmem:[#allocation29_spill] sm:$0xff] }
 0x530   :  { %v2149_v20 = vpop.eup %2148 }
 0x531   :  { %v2151_v12 = vpop.eup %2150  ;;  %v1334_v6 = vmul.f32 %v2149_v20, %v3103_v19  ;;  %v3667_v19 = vld [vmem:[#allocation41_spill] sm:$0xff]  ;;  %v3675_v20 = vld [vmem:[#allocation26_spill] sm:$0xff] }
 0x532   :  { %v2153_v13 = vpop.eup %2152 }
 0x533   :  { %v1333_v15 = vmul.f32 %v2153_v13, %v2151_v12  ;;  %v2155_v31 = vpop.eup %2154  ;;  %v3676_v12 = vld [vmem:[#allocation27_spill] sm:$0xff]  ;;  %v3677_v13 = vld [vmem:[#allocation28_spill] sm:$0xff] }
 0x535   :  { %v3253_v62 = vadd.f32 %v1334_v6, %v1333_v15  ;;  %v3679_v6 = vld [vmem:[#allocation30_spill] sm:$0xff]  ;;  %v3680_v15 = vld [vmem:[#allocation31_spill] sm:$0xff] }
 0x537   :  { %2156 = vtanh.f32 %v3253_v62 }
 0x544   :  { %v2157_v56 = vpop.eup %2156 }
 0x545   :  { %v1337_v57 = vmul.f32 %v2157_v56, %v2155_v31  ;;  %v3681_v31 = vld [vmem:[#allocation32_spill] sm:$0xff]  ;;  %v3682_v56 = vmov 0.0  }
 0x547   :  { %1408 = vmatmul.mubr.f32.vlgmr.msra.gmra.mxu0 %v1337_v57  ;;  %1479 = vmatmul.mubr.f32.vlgmr.msra.gmra.mxu1 %v1337_v57  ;;  %v3683_v57 = vld [vmem:[#allocation33_spill] sm:$0xff] }
 0x548   :  { %1519 = vmatpush1.msra.mxu0 %v2984_v18  ;;  %1590 = vmatpush1.msra.mxu1 %v2987_v3 }
 0x549   :  { %1520 = vmatprep.subr.mxu0 %v2990_v2  ;;  %1591 = vmatprep.subr.mxu1 %v2993_v58 }
 0x54a   :  { %1521 = vmatpush1.msra.mxu0 %v2996_v9  ;;  %1592 = vmatpush1.msra.mxu1 %v2999_v5 }
 0x54b   :  { %1522 = vmatprep.subr.mxu0 %v3002_v60  ;;  %1593 = vmatprep.subr.mxu1 %v3005_v45 }
 0x54c   :  { %1523 = vmatpush1.msra.mxu0 %v3008_v59  ;;  %1594 = vmatpush1.msra.mxu1 %v3011_v1 }
 0x54d   :  { %1524 = vmatprep.subr.mxu0 %v3014_v4  ;;  %1595 = vmatprep.subr.mxu1 %v3017_v8 }
 0x54e   :  { %1525 = vmatpush1.msra.mxu0 %v3020_v54  ;;  %1596 = vmatpush1.msra.mxu1 %v3023_v11 }
 0x54f   :  { %1526 = vmatprep.subr.mxu0 %v3026_v0  ;;  %1597 = vmatprep.subr.mxu1 %v3029_v37 }
 0x550   :  { %1527 = vmatpush1.msra.mxu0 %v3641_v23  ;;  %1598 = vmatpush1.msra.mxu1 %v3642_v24 }
 0x551   :  { %1528 = vmatprep.subr.mxu0 %v3038_v10  ;;  %1599 = vmatprep.subr.mxu1 %v3041_v35 }
 0x552   :  { %1529 = vmatpush1.msra.mxu0 %v3044_v61  ;;  %1600 = vmatpush1.msra.mxu1 %v3047_v7 }
 0x553   :  { %1530 = vmatprep.subr.mxu0 %v3050_v38  ;;  %1601 = vmatprep.subr.mxu1 %v3053_v63 }
 0x554   :  { %1531 = vmatpush1.msra.mxu0 %v3130_v25  ;;  %1602 = vmatpush1.msra.mxu1 %v3133_v26 }
 0x555   :  { %1532 = vmatprep.subr.mxu0 %v3136_v28  ;;  %1603 = vmatprep.subr.mxu1 %v3139_v29 }
 0x556   :  { %1533 = vmatpush1.msra.mxu0 %v3142_v30  ;;  %1604 = vmatpush1.msra.mxu1 %v3145_v32 }
 0x557   :  { %1534 = vmatprep.subr.mxu0 %v3148_v36  ;;  %1605 = vmatprep.subr.mxu1 %v3151_v39 }
 0x558   :  { %1535 = vmatpush1.msra.mxu0 %v3154_v40  ;;  %1606 = vmatpush1.msra.mxu1 %v3157_v41 }
 0x559   :  { %1536 = vmatprep.subr.mxu0 %v3160_v42  ;;  %1607 = vmatprep.subr.mxu1 %v3163_v43 }
 0x55a   :  { %1537 = vmatpush1.msra.mxu0 %v3166_v44  ;;  %1608 = vmatpush1.msra.mxu1 %v3169_v46 }
 0x55b   :  { %1538 = vmatprep.subr.mxu0 %v3172_v47  ;;  %1609 = vmatprep.subr.mxu1 %v3175_v48 }
 0x55c   :  { %1539 = vmatpush1.msra.mxu0 %v3178_v49  ;;  %1610 = vmatpush1.msra.mxu1 %v3181_v50 }
 0x55d   :  { %1540 = vmatprep.subr.mxu0 %v3184_v51  ;;  %1611 = vmatprep.subr.mxu1 %v3187_v52 }
 0x55e   :  { %1541 = vmatpush1.msra.mxu0 %v3665_v33  ;;  %1612 = vmatpush1.msra.mxu1 %v3666_v34 }
 0x55f   :  { %1542 = vmatprep.subr.mxu0 %v3667_v19  ;;  %1613 = vmatprep.subr.mxu1 %v3668_v53  ;;  %v3689_v19 = vld [vmem:[#allocation55_spill] sm:$0xff] }
 0x560   :  { %1543 = vmatpush1.msra.mxu0 %v3669_v55  ;;  %1614 = vmatpush1.msra.mxu1 %v3670_v27  ;;  %v3688_v55 = vld [vmem:[#allocation58_spill] sm:$0xff] }
 0x561   :  { %1544 = vmatprep.subr.mxu0 %v3671_v16  ;;  %1615 = vmatprep.subr.mxu1 %v3672_v21  ;;  %v3687_v16 = vld [vmem:[#allocation57_spill] sm:$0xff] }
 0x562   :  { %1545 = vmatpush1.msra.mxu0 %v3673_v22  ;;  %1616 = vmatpush1.msra.mxu1 %v3674_v17  ;;  %v3684_v17 = vld [vmem:[#allocation18_spill] sm:$0xff]  ;;  %v3686_v22 = vld [vmem:[#allocation56_spill] sm:$0xff] }
 0x563   :  { %1546 = vmatprep.subr.mxu0 %v3675_v20  ;;  %1617 = vmatprep.subr.mxu1 %v3676_v12  ;;  %v3685_v20 = vld [vmem:[#allocation19_spill] sm:$0xff] }
 0x564   :  { %1547 = vmatpush1.msra.mxu0 %v3677_v13  ;;  %1618 = vmatpush1.msra.mxu1 %v3678_v14 }
 0x565   :  { %1548 = vmatprep.subr.mxu0 %v3679_v6  ;;  %1619 = vmatprep.subr.mxu1 %v3680_v15 }
 0x566   :  { %1549 = vmatpush1.msra.mxu0 %v3681_v31  ;;  %1582 = vmatprep.mubr.f32.mxu0 %v3682_v56 }
 0x567   :  { %1620 = vmatpush1.msra.mxu1 %v3683_v57  ;;  %1653 = vmatprep.mubr.f32.mxu1 %v3682_v56 }
 0x568   :  { %1693 = vmatprep.subr.mxu0 %v3684_v17  ;;  %1764 = vmatprep.subr.mxu1 %v3685_v20 }
 0x607   :  { %v1409_v12 = vpop.f32.mrf.mxu0  ;;  %v1480_v13 = vpop.f32.mrf.mxu1 }
 0x608   :  { %v1487_v14 = vadd.f32 %v1480_v13, %v3686_v22  ;;  %v1485_v17 = vadd.f32 %v1409_v12, %v3689_v19 }
 0x609   :  { %v1411_v21 = vpop.f32.mrf.mxu0  ;;  %v1482_v27 = vpop.f32.mrf.mxu1 }
 0x60a   :  { %v2006_v6 = vmul.f32 -1.442695, %v1487_v14  ;;  %v1486_v15 = vadd.f32 %v1411_v21, %v3687_v16  ;;  %v1488_v57 = vadd.f32 %v1482_v27, %v3688_v55 }
 0x60c   :  { %2158 = vpow2.f32 %v2006_v6  ;;  %v2005_v31 = vmul.f32 -1.442695, %v1486_v15  ;;  %v2007_v53 = vmul.f32 -1.442695, %v1488_v57  ;;  %v1877_v57 = vld [vmem:[#allocation9 + $0x70] sm:$0xff] }
 0x60e   :  { %2160 = vpow2.f32 %v2005_v31 }
 0x60f   :  { %2162 = vpow2.f32 %v2007_v53 }
 0x619   :  { %v2159_v56 = vpop.eup %2158 }
 0x61a   :  { %v1499_v34 = vadd.f32 1.0, %v2159_v56  ;;  %v1878_v56 = vld [vmem:[#allocation9 + $0x78] sm:$0xff] }
 0x61b   :  { %v2161_v20 = vpop.eup %2160 }
 0x61c   :  { %2164 = vrcp.f32 %v1499_v34  ;;  %v1493_v33 = vadd.f32 1.0, %v2161_v20  ;;  %v2163_v22 = vpop.eup %2162  ;;  %v1875_v20 = vld [vmem:[#allocation9 + $0x60] sm:$0xff] }
 0x61d   :  { %2166 = vtanh.f32 %v1485_v17  ;;  %v1505_v14 = vadd.f32 1.0, %v2163_v22  ;;  %v1876_v17 = vld [vmem:[#allocation9 + $0x68] sm:$0xff]  ;;  %v1874_v22 = vld [vmem:[#allocation9 + $0x58] sm:$0xff] }
 0x61e   :  { %2168 = vrcp.f32 %v1493_v33 }
 0x61f   :  { %2170 = vrcp.f32 %v1505_v14  ;;  %v1870_v14 = vld [vmem:[#allocation9 + $0x38] sm:$0xff] }
 0x629   :  { %v2165_v13 = vpop.eup %2164 }
 0x62a   :  { %v2167_v16 = vpop.eup %2166  ;;  %v1509_v6 = vmul.f32 %v2165_v13, %v3253_v62  ;;  %v1873_v13 = vld [vmem:[#allocation9 + $0x50] sm:$0xff] }
 0x62b   :  { %v2169_v21 = vpop.eup %2168 }
 0x62c   :  { %v1508_v15 = vmul.f32 %v2169_v21, %v2167_v16  ;;  %v2171_v19 = vpop.eup %2170  ;;  %v1872_v16 = vld [vmem:[#allocation9 + $0x48] sm:$0xff]  ;;  %v1871_v21 = vld [vmem:[#allocation9 + $0x40] sm:$0xff] }
 0x62e   :  { %v3327_v55 = vadd.f32 %v1509_v6, %v1508_v15  ;;  %v1869_v6 = vld [vmem:[#allocation9 + $0x30] sm:$0xff]  ;;  %v1868_v15 = vld [vmem:[#allocation9 + $0x28] sm:$0xff] }
 0x630   :  { %2172 = vtanh.f32 %v3327_v55 }
 0x63d   :  { %v2173_v27 = vpop.eup %2172 }
 0x63e   :  { %v1512_v53 = vmul.f32 %v2173_v27, %v2171_v19  ;;  %v1866_v19 = vld [vmem:[#allocation9 + $0x18] sm:$0xff]  ;;  %v1865_v27 = vld [vmem:[#allocation9 + $0x10] sm:$0xff] }
 0x640   :  { %1583 = vmatmul.mubr.f32.vlgmr.msra.gmra.mxu0 %v1512_v53  ;;  %1654 = vmatmul.mubr.f32.vlgmr.msra.gmra.mxu1 %v1512_v53  ;;  %v1864_v53 = vld [vmem:[#allocation9 + $0x8] sm:$0xff] }
 0x641   :  { %1694 = vmatpush1.msra.mxu0 %v2984_v18  ;;  %1765 = vmatpush1.msra.mxu1 %v2987_v3  ;;  %v3690_v18 = vld [vmem:[#allocation17_spill] sm:$0xff]  ;;  %v3691_v3 = vld [vmem:[#allocation40_spill] sm:$0xff] }
 0x642   :  { %1695 = vmatprep.subr.mxu0 %v2990_v2  ;;  %1766 = vmatprep.subr.mxu1 %v2993_v58  ;;  %v3692_v2 = vld [vmem:[#allocation41_spill] sm:$0xff]  ;;  %v3693_v58 = vld [vmem:[#allocation42_spill] sm:$0xff] }
 0x643   :  { %1696 = vmatpush1.msra.mxu0 %v2996_v9  ;;  %1767 = vmatpush1.msra.mxu1 %v2999_v5  ;;  %v3694_v9 = vld [vmem:[#allocation39_spill] sm:$0xff]  ;;  %v3695_v5 = vld [vmem:[#allocation21_spill] sm:$0xff] }
 0x644   :  { %1697 = vmatprep.subr.mxu0 %v3002_v60  ;;  %1768 = vmatprep.subr.mxu1 %v3005_v45  ;;  %v3696_v60 = vld [vmem:[#allocation22_spill] sm:$0xff]  ;;  %v3697_v45 = vld [vmem:[#allocation23_spill] sm:$0xff] }
 0x645   :  { %1698 = vmatpush1.msra.mxu0 %v3008_v59  ;;  %1769 = vmatpush1.msra.mxu1 %v3011_v1  ;;  %v3698_v59 = vld [vmem:[#allocation24_spill] sm:$0xff]  ;;  %v3699_v1 = vld [vmem:[#allocation25_spill] sm:$0xff] }
 0x646   :  { %1699 = vmatprep.subr.mxu0 %v3014_v4  ;;  %1770 = vmatprep.subr.mxu1 %v3017_v8  ;;  %v3700_v4 = vld [vmem:[#allocation26_spill] sm:$0xff]  ;;  %v3701_v8 = vld [vmem:[#allocation27_spill] sm:$0xff] }
 0x647   :  { %1700 = vmatpush1.msra.mxu0 %v3020_v54  ;;  %1771 = vmatpush1.msra.mxu1 %v3023_v11  ;;  %v3702_v54 = vld [vmem:[#allocation28_spill] sm:$0xff]  ;;  %v3703_v11 = vld [vmem:[#allocation29_spill] sm:$0xff] }
 0x648   :  { %1701 = vmatprep.subr.mxu0 %v3026_v0  ;;  %1772 = vmatprep.subr.mxu1 %v3029_v37  ;;  %v3704_v0 = vld [vmem:[#allocation30_spill] sm:$0xff]  ;;  %v3705_v37 = vld [vmem:[#allocation31_spill] sm:$0xff] }
 0x649   :  { %1702 = vmatpush1.msra.mxu0 %v3641_v23  ;;  %1773 = vmatpush1.msra.mxu1 %v3642_v24 }
 0x64a   :  { %1703 = vmatprep.subr.mxu0 %v3038_v10  ;;  %1774 = vmatprep.subr.mxu1 %v3041_v35  ;;  %v3708_v10 = vld [vmem:[#allocation33_spill] sm:$0xff] }
 0x64b   :  { %1704 = vmatpush1.msra.mxu0 %v3044_v61  ;;  %1775 = vmatpush1.msra.mxu1 %v3047_v7  ;;  %v3709_v7 = vld [vmem:[#allocation60_spill] sm:$0xff] }
 0x64c   :  { %1705 = vmatprep.subr.mxu0 %v3050_v38  ;;  %1776 = vmatprep.subr.mxu1 %v3053_v63  ;;  %v3706_v38 = vld [vmem:[#allocation32_spill] sm:$0xff]  ;;  %v3707_v63 = vmov 0.0  }
 0x64d   :  { %1706 = vmatpush1.msra.mxu0 %v3130_v25  ;;  %1777 = vmatpush1.msra.mxu1 %v3133_v26  ;;  %v3710_v26 = vld [vmem:[#allocation61_spill] sm:$0xff] }
 0x64e   :  { %1707 = vmatprep.subr.mxu0 %v3136_v28  ;;  %1778 = vmatprep.subr.mxu1 %v3139_v29 }
 0x64f   :  { %1708 = vmatpush1.msra.mxu0 %v3142_v30  ;;  %1779 = vmatpush1.msra.mxu1 %v3145_v32  ;;  %v3711_v32 = vld [vmem:[#allocation62_spill] sm:$0xff] }
 0x650   :  { %1709 = vmatprep.subr.mxu0 %v3148_v36  ;;  %1780 = vmatprep.subr.mxu1 %v3151_v39 }
 0x651   :  { %1710 = vmatpush1.msra.mxu0 %v3154_v40  ;;  %1781 = vmatpush1.msra.mxu1 %v3157_v41  ;;  %v3712_v41 = vld [vmem:[#allocation59_spill] sm:$0xff] }
 0x652   :  { %1711 = vmatprep.subr.mxu0 %v3160_v42  ;;  %1782 = vmatprep.subr.mxu1 %v3163_v43 }
 0x653   :  { %1712 = vmatpush1.msra.mxu0 %v3166_v44  ;;  %1783 = vmatpush1.msra.mxu1 %v3169_v46 }
 0x654   :  { %1713 = vmatprep.subr.mxu0 %v3172_v47  ;;  %1784 = vmatprep.subr.mxu1 %v3175_v48 }
 0x655   :  { %1714 = vmatpush1.msra.mxu0 %v3178_v49  ;;  %1785 = vmatpush1.msra.mxu1 %v3181_v50 }
 0x656   :  { %1715 = vmatprep.subr.mxu0 %v3184_v51  ;;  %1786 = vmatprep.subr.mxu1 %v3187_v52 }
 0x657   :  { %1716 = vmatpush1.msra.mxu0 %v3690_v18  ;;  %1787 = vmatpush1.msra.mxu1 %v3691_v3  ;;  %v1863_v18 = vld [vmem:[#allocation9] sm:$0xff] }
 0x658   :  { %1717 = vmatprep.subr.mxu0 %v3692_v2  ;;  %1788 = vmatprep.subr.mxu1 %v3693_v58  ;;  %v3713_v58 = vld [vmem:[#allocation64_spill] sm:$0xff] }
 0x659   :  { %1718 = vmatpush1.msra.mxu0 %v3694_v9  ;;  %1789 = vmatpush1.msra.mxu1 %v3695_v5 }
 0x65a   :  { %1719 = vmatprep.subr.mxu0 %v3696_v60  ;;  %1790 = vmatprep.subr.mxu1 %v3697_v45  ;;  %v3714_v45 = vld [vmem:[#allocation65_spill] sm:$0xff] }
 0x65b   :  { %1720 = vmatpush1.msra.mxu0 %v3698_v59  ;;  %1791 = vmatpush1.msra.mxu1 %v3699_v1 }
 0x65c   :  { %1721 = vmatprep.subr.mxu0 %v3700_v4  ;;  %1792 = vmatprep.subr.mxu1 %v3701_v8  ;;  %v3715_v8 = vld [vmem:[#allocation66_spill] sm:$0xff] }
 0x65d   :  { %1722 = vmatpush1.msra.mxu0 %v3702_v54  ;;  %1793 = vmatpush1.msra.mxu1 %v3703_v11 }
 0x65e   :  { %1723 = vmatprep.subr.mxu0 %v3704_v0  ;;  %1794 = vmatprep.subr.mxu1 %v3705_v37  ;;  %v3716_v37 = vld [vmem:[#allocation63_spill] sm:$0xff] }
 0x65f   :  { %1724 = vmatpush1.msra.mxu0 %v3706_v38  ;;  %1757 = vmatprep.mubr.f32.mxu0 %v3707_v63 }
 0x660   :  { %1795 = vmatpush1.msra.mxu1 %v3708_v10  ;;  %1828 = vmatprep.mubr.f32.mxu1 %v3707_v63 }
 0x661   :  { %2032 = vmatprep.subr.mxu0 %v3707_v63 }
 0x700   :  { %v1584_v35 = vpop.f32.mrf.mxu0  ;;  %v1655_v61 = vpop.f32.mrf.mxu1 }
 0x701   :  { %v1662_v23 = vadd.f32 %v1655_v61, %v3709_v7  ;;  %v1660_v42 = vadd.f32 %v1584_v35, %v3712_v41 }
 0x702   :  { %v1586_v24 = vpop.f32.mrf.mxu0  ;;  %v1657_v30 = vpop.f32.mrf.mxu1 }
 0x703   :  { %v2009_v25 = vmul.f32 -1.442695, %v1662_v23  ;;  %v1661_v28 = vadd.f32 %v1586_v24, %v3710_v26  ;;  %v1663_v36 = vadd.f32 %v1657_v30, %v3711_v32 }
 0x705   :  { %2174 = vpow2.f32 %v2009_v25  ;;  %v2008_v29 = vmul.f32 -1.442695, %v1661_v28  ;;  %v2010_v39 = vmul.f32 -1.442695, %v1663_v36 }
 0x707   :  { %2176 = vpow2.f32 %v2008_v29 }
 0x708   :  { %2178 = vpow2.f32 %v2010_v39  ;;  %v2014_v39 = vld [vmem:[%s3435_s5] ss:$0 sm:$0xff] }
 0x712   :  { %v2175_v40 = vpop.eup %2174 }
 0x713   :  { %v1674_v43 = vadd.f32 1.0, %v2175_v40 }
 0x714   :  { %v2177_v44 = vpop.eup %2176 }
 0x715   :  { %2180 = vrcp.f32 %v1674_v43  ;;  %v1668_v46 = vadd.f32 1.0, %v2177_v44  ;;  %v2179_v47 = vpop.eup %2178 }
 0x716   :  { %2182 = vtanh.f32 %v1660_v42  ;;  %v1680_v51 = vadd.f32 1.0, %v2179_v47 }
 0x717   :  { %2184 = vrcp.f32 %v1668_v46 }
 0x718   :  { %2186 = vrcp.f32 %v1680_v51 }
 0x722   :  { %v2181_v48 = vpop.eup %2180 }
 0x723   :  { %v2183_v49 = vpop.eup %2182  ;;  %v1684_v52 = vmul.f32 %v2181_v48, %v3327_v55  ;;  %v1867_v55 = vld [vmem:[#allocation9 + $0x20] sm:$0xff] }
 0x724   :  { %v2185_v50 = vpop.eup %2184 }
 0x725   :  { %v1683_v62 = vmul.f32 %v2185_v50, %v2183_v49  ;;  %v2187_v34 = vpop.eup %2186 }
 0x727   :  { %v3400_v33 = vadd.f32 %v1684_v52, %v1683_v62 }
 0x729   :  { %2188 = vtanh.f32 %v3400_v33 }
 0x736   :  { %v2189_v12 = vpop.eup %2188 }
 0x737   :  { %v1687_v31 = vmul.f32 %v2189_v12, %v2187_v34 }
 0x739   :  { %1758 = vmatmul.mubr.f32.vlgmr.msra.gmra.mxu0 %v1687_v31  ;;  %1829 = vmatmul.mubr.f32.vlgmr.msra.gmra.mxu1 %v1687_v31 }
 0x73a   :  { %2033 = vmatpush3.msra.mxu0 %v1878_v56  ;;  %2064 = vmatprep.mubr.msk.f32.mxu0 %vm2387_vm1, %v3707_v63 }
 0x73b   :  { %2034 = vmatprep.subr.mxu0 %v3707_v63 }
 0x73c   :  { %2035 = vmatpush3.msra.mxu0 %v1877_v57 }
 0x73d   :  { %2036 = vmatprep.subr.mxu0 %v3707_v63 }
 0x73e   :  { %2037 = vmatpush3.msra.mxu0 %v1876_v17 }
 0x73f   :  { %2038 = vmatprep.subr.mxu0 %v3707_v63 }
 0x740   :  { %2039 = vmatpush3.msra.mxu0 %v1875_v20 }
 0x741   :  { %2040 = vmatprep.subr.mxu0 %v3707_v63 }
 0x742   :  { %2041 = vmatpush3.msra.mxu0 %v1874_v22 }
 0x743   :  { %2042 = vmatprep.subr.mxu0 %v3707_v63 }
 0x744   :  { %2043 = vmatpush3.msra.mxu0 %v1873_v13 }
 0x745   :  { %2044 = vmatprep.subr.mxu0 %v3707_v63 }
 0x746   :  { %2045 = vmatpush3.msra.mxu0 %v1872_v16 }
 0x747   :  { %2046 = vmatprep.subr.mxu0 %v3707_v63 }
 0x748   :  { %2047 = vmatpush3.msra.mxu0 %v1871_v21 }
 0x749   :  { %2048 = vmatprep.subr.mxu0 %v3707_v63 }
 0x74a   :  { %2049 = vmatpush3.msra.mxu0 %v1870_v14 }
 0x74b   :  { %2050 = vmatprep.subr.mxu0 %v3707_v63 }
 0x74c   :  { %2051 = vmatpush3.msra.mxu0 %v1869_v6 }
 0x74d   :  { %2052 = vmatprep.subr.mxu0 %v3707_v63 }
 0x74e   :  { %2053 = vmatpush3.msra.mxu0 %v1868_v15 }
 0x74f   :  { %2054 = vmatprep.subr.mxu0 %v3707_v63 }
 0x750   :  { %2055 = vmatpush3.msra.mxu0 %v1867_v55 }
 0x751   :  { %2056 = vmatprep.subr.mxu0 %v3707_v63 }
 0x752   :  { %2057 = vmatpush3.msra.mxu0 %v1866_v19 }
 0x753   :  { %2058 = vmatprep.subr.mxu0 %v3707_v63 }
 0x754   :  { %2059 = vmatpush3.msra.mxu0 %v1865_v27 }
 0x755   :  { %2060 = vmatprep.subr.mxu0 %v3707_v63 }
 0x756   :  { %2061 = vmatpush3.msra.mxu0 %v1864_v53 }
 0x757   :  { %2062 = vmatprep.subr.mxu0 %v3707_v63 }
 0x758   :  { %2063 = vmatpush3.msra.mxu0 %v1863_v18 }
 0x7f9   :  { %v1759_v3 = vpop.f32.mrf.mxu0  ;;  %v1830_v2 = vpop.f32.mrf.mxu1 }
 0x7fa   :  { %v1837_v9 = vadd.f32 %v1830_v2, %v3713_v58  ;;  %v1835_v38 = vadd.f32 %v1759_v3, %v3716_v37 }
 0x7fb   :  { %v1761_v5 = vpop.f32.mrf.mxu0  ;;  %v1832_v4 = vpop.f32.mrf.mxu1 }
 0x7fc   :  { %v2012_v60 = vmul.f32 -1.442695, %v1837_v9  ;;  %v1836_v59 = vadd.f32 %v1761_v5, %v3714_v45  ;;  %v1838_v54 = vadd.f32 %v1832_v4, %v3715_v8 }
 0x7fe   :  { %2190 = vpow2.f32 %v2012_v60  ;;  %v2011_v1 = vmul.f32 -1.442695, %v1836_v59  ;;  %v2013_v11 = vmul.f32 -1.442695, %v1838_v54 }
 0x800   :  { %2192 = vpow2.f32 %v2011_v1 }
 0x801   :  { %2194 = vpow2.f32 %v2013_v11 }
 0x80b   :  { %v2191_v0 = vpop.eup %2190 }
 0x80c   :  { %v1849_v63 = vadd.f32 1.0, %v2191_v0 }
 0x80d   :  { %v2193_v10 = vpop.eup %2192 }
 0x80e   :  { %2196 = vrcp.f32 %v1849_v63  ;;  %v1843_v35 = vadd.f32 1.0, %v2193_v10  ;;  %v2195_v61 = vpop.eup %2194 }
 0x80f   :  { %2198 = vtanh.f32 %v1835_v38  ;;  %v1855_v25 = vadd.f32 1.0, %v2195_v61 }
 0x810   :  { %2200 = vrcp.f32 %v1843_v35 }
 0x811   :  { %2202 = vrcp.f32 %v1855_v25 }
 0x81b   :  { %v2197_v7 = vpop.eup %2196 }
 0x81c   :  { %v2199_v23 = vpop.eup %2198  ;;  %v1859_v26 = vmul.f32 %v2197_v7, %v3400_v33 }
 0x81d   :  { %v2201_v24 = vpop.eup %2200 }
 0x81e   :  { %v1858_v28 = vmul.f32 %v2201_v24, %v2199_v23  ;;  %v2203_v30 = vpop.eup %2202 }
 0x820   :  { %v1860_v29 = vadd.f32 %v1859_v26, %v1858_v28 }
 0x822   :  { %2204 = vtanh.f32 %v1860_v29 }
 0x82f   :  { %v2205_v32 = vpop.eup %2204 }
 0x830   :  { %v1862_v36 = vmul.f32 %v2205_v32, %v2203_v30 }
 0x832   :  { %2065 = vmatmul.mubr.f32.vlgmr.msra.gmra.mxu0 %v1862_v36 }
 0x8f2   :  { %v1952_v40 = vpop.f32.mrf.mxu0 }
 0x8f3   :  { %v1953_v41 = vadd.f32 %v2014_v39, %v1952_v40 }
 0x8f4   :  { %v2066_v42 = vpop.f32.mrf.mxu0 }
 0x8f5   :  { %1956 = vst [vmem:[#allocation11] sm:$0xff] %v1953_v41 }
 0x8f6   :  { %2361 = shalt.err (!%p2358_p10)
}
 0x8f7   :  { %1966 = dma.vmem_to_hbm [thread:$0]  %s1964_s21, 128, %s3436_s6, [#allocation5]  }
 0x8f8   :  { %2376 = dma.done.wait [#allocation5], 128  }
 0x8f9   :  { %2377 = vsyncadd [#allocation5], 4294967168 }
 0x8fa   :  { %1970 = vsyncpa [#allocation4], 1 }
 0x8fb   :  { %1971 = vsyncpa [#allocation7], 1 }
 0x8fc   :  { %1972 = vsyncpa [#allocation10], 1 }
 0x8fd   :  { %1973 = vsyncpa [#allocation5], 1 }

</bundles_post_ra>
